<compile_context>
chip_gen: v7x
topology: tpu7x:2x2x1
jax: 0.10.0
libtpu: 0.0.40
codegen_flags: <defaults>
</compile_context>

<pallas_src>
import functools
import math

import jax
import jax.numpy as jnp
from jax import lax
from jax.experimental import pallas as pl
from jax.experimental.pallas import tpu as pltpu


CONFIG = dict(
    vocab_size=100,
    hidden_size=32,
    num_hidden_layers=2,
    num_attention_heads=4,
    intermediate_size=64,
    max_position_embeddings=64,
    type_vocab_size=2,
    layer_norm_eps=1e-12,
    hidden_dropout_prob=0.1,   # eval mode -> dropout is identity
)


# ----------------------------- in-kernel helpers -----------------------------

def _layernorm(x, gamma, beta, eps):
    mean = jnp.mean(x, axis=-1, keepdims=True)
    var = jnp.mean(jnp.square(x - mean), axis=-1, keepdims=True)
    return (x - mean) * lax.rsqrt(var + eps) * gamma + beta


# --------------------------------- fused kernel -------------------------------

def bert_fused_kernel(
        # per-batch inputs (blocked by the batch grid axis)
        mask_ref,             # (1, 1, S)  f32 key-keep mask for this batch row
        x_emb_ref,            # (S, H)     pre-LN embedding sum for this batch row
        # constants (whole arrays, VMEM-resident across all grid steps)
        eg_ref, eb_ref,       # (1, H)     embedding LayerNorm gamma/beta
        wqkv_ref, bqkv_ref,   # (L, H, 3H) bf16 (scale folded into Q), (L, 1, 3H) f32
        wo_ref, bo_ref,       # (L, H, H)  bf16, (L, 1, H) f32
        l1g_ref, l1b_ref,     # (L, 1, H)  f32
        w1_ref, b1_ref,       # (L, H, I)  bf16, (L, 1, I) f32
        w2_ref, b2_ref,       # (L, I, H)  bf16, (L, 1, H) f32
        l2g_ref, l2b_ref,     # (L, 1, H)  f32
        wp_ref, bp_ref,       # (H, H)     bf16, (1, H) f32   pooler
        # outputs
        xout_ref,             # (S, H)     f32   this batch's sequence output
        pooled_ref,           # (1, 1, H)  f32   this batch's pooled output
        *, num_heads, eps, num_layers):

    S, H = x_emb_ref.shape
    hd = H // num_heads

    # additive attention bias from the per-batch key-keep vector: (1, S)
    key_bias = jnp.where(mask_ref[0] > 0.5, 0.0, -1e9).astype(jnp.float32)

    # ---- embedding LayerNorm (dropout = identity in eval mode) ----
    x0 = _layernorm(x_emb_ref[...].astype(jnp.float32), eg_ref[...], eb_ref[...], eps)

    def layer_body(l, x):
        xb = x.astype(jnp.bfloat16)

        # fused QKV projection: one (S,H) @ (H,3H) MXU matmul, f32 accumulate
        qkv = jnp.dot(xb, wqkv_ref[l], preferred_element_type=jnp.float32) + bqkv_ref[l]
        wo = wo_ref[l]                                    # (H, H) bf16

        # Multi-head attention; each head's context is folded straight into the
        # matching row-slice of W_o (no concat).
        # NOTE: at this toy H=32 every operand is sub-128-lane anyway; at real
        # BERT sizes (hd=64) heads should be processed in lane-128 groups instead.
        acc = None
        for h in range(num_heads):                        # static unroll over heads
            lo = h * hd
            qh = qkv[:, lo:lo + hd].astype(jnp.bfloat16)              # (S, hd)
            kh = qkv[:, H + lo:H + lo + hd].astype(jnp.bfloat16)
            vh = qkv[:, 2 * H + lo:2 * H + lo + hd].astype(jnp.bfloat16)
            # 1/sqrt(hd) already folded into the Q weight columns at init
            s = lax.dot_general(qh, kh, (((1,), (1,)), ((), ())),
                                preferred_element_type=jnp.float32) + key_bias
            s = s - jnp.max(s, axis=-1, keepdims=True)
            p = jnp.exp(s)
            p = p * pl.reciprocal(jnp.sum(p, axis=-1, keepdims=True), approx=True)
            ctx = jnp.dot(p.astype(jnp.bfloat16), vh,
                          preferred_element_type=jnp.float32)          # (S, hd)
            term = jnp.dot(ctx.astype(jnp.bfloat16), wo[lo:lo + hd, :],
                           preferred_element_type=jnp.float32)         # (S, H)
            acc = term if acc is None else acc + term
        attn_out = acc + bo_ref[l]

        h1 = _layernorm(x + attn_out, l1g_ref[l], l1b_ref[l], eps)

        # ---- feed-forward ----
        inter = jnp.dot(h1.astype(jnp.bfloat16), w1_ref[l],
                        preferred_element_type=jnp.float32) + b1_ref[l]
        inter = jax.nn.gelu(inter, approximate=True)  # TODO(synk): exact (erf) GELU if the reference EncoderLayer uses nn.GELU()
        ffn = jnp.dot(inter.astype(jnp.bfloat16), w2_ref[l],
                      preferred_element_type=jnp.float32) + b2_ref[l]
        return _layernorm(h1 + ffn, l2g_ref[l], l2b_ref[l], eps)

    x = lax.fori_loop(0, num_layers, layer_body, x0, unroll=True)

    # ---- write sequence output + pooler (CLS = row 0 of this batch) ----
    xout_ref[...] = x.astype(xout_ref.dtype)
    cls = x[0:1, :].astype(jnp.bfloat16)                                # (1, H)
    pooled = jnp.tanh(jnp.dot(cls, wp_ref[...],
                              preferred_element_type=jnp.float32) + bp_ref[...])
    pooled_ref[0] = pooled.astype(pooled_ref.dtype)


# ------------------------------- wrapper --------------------------------------

def bert_pallas_forward(params, input_ids, attention_mask, token_type_ids, cfg):
    B, S = input_ids.shape
    H = cfg["hidden_size"]
    L = cfg["num_hidden_layers"]
    nh = cfg["num_attention_heads"]
    eps = cfg["layer_norm_eps"]
    N = B * S

    if token_type_ids is None:
        token_type_ids = jnp.zeros_like(input_ids)
    if attention_mask is None:
        attention_mask = jnp.ones((B, S), jnp.float32)

    # embedding gathers are glue (plain JAX); everything else runs in one kernel
    pos_ids = jnp.arange(S)
    x_emb = (params["tok_emb"][input_ids]
             + params["pos_emb"][pos_ids][None, :, :]
             + params["type_emb"][token_type_ids]).astype(jnp.float32).reshape(N, H)

    # per-batch key-keep mask, (B, 1, S) so the per-batch block is (1, 1, S)
    mask3 = attention_mask.astype(jnp.float32).reshape(B, 1, S)

    st = params["stacked"]

    def whole(arr):
        zeros = (0,) * arr.ndim
        return pl.BlockSpec(arr.shape, lambda b: zeros)

    in_specs = [
        pl.BlockSpec((1, 1, S), lambda b: (b, 0, 0)),     # mask   (per batch)
        pl.BlockSpec((S, H), lambda b: (b, 0)),           # x_emb  (per batch)
        whole(params["emb_ln_g"]), whole(params["emb_ln_b"]),
        whole(st["wqkv"]), whole(st["bqkv"]),
        whole(st["wo"]), whole(st["bo"]),
        whole(st["ln1_g"]), whole(st["ln1_b"]),
        whole(st["w1"]), whole(st["b1"]),
        whole(st["w2"]), whole(st["b2"]),
        whole(st["ln2_g"]), whole(st["ln2_b"]),
        whole(params["pool_w"]), whole(params["pool_b"]),
    ]
    out_specs = [pl.BlockSpec((S, H), lambda b: (b, 0)),
                 pl.BlockSpec((1, 1, H), lambda b: (b, 0, 0))]
    out_shape = [jax.ShapeDtypeStruct((N, H), jnp.float32),
                 jax.ShapeDtypeStruct((B, 1, H), jnp.float32)]

    kernel = functools.partial(bert_fused_kernel,
                               num_heads=nh, eps=eps, num_layers=L)

    x_flat, pooled = pl.pallas_call(
        kernel,
        grid=(B,),
        in_specs=in_specs,
        out_specs=out_specs,
        out_shape=out_shape,
        compiler_params=pltpu.CompilerParams(dimension_semantics=("parallel",)),
    )(mask3, x_emb,
      params["emb_ln_g"], params["emb_ln_b"],
      st["wqkv"], st["bqkv"], st["wo"], st["bo"],
      st["ln1_g"], st["ln1_b"],
      st["w1"], st["b1"], st["w2"], st["b2"],
      st["ln2_g"], st["ln2_b"],
      params["pool_w"], params["pool_b"])

    return x_flat.reshape(B, S, H), pooled.reshape(B, H)


# ------------------------------ parameter init --------------------------------

def init_params(key, cfg):
    H = cfg["hidden_size"]
    I = cfg["intermediate_size"]
    L = cfg["num_hidden_layers"]
    nh = cfg["num_attention_heads"]
    hd = H // nh
    scale = 1.0 / math.sqrt(hd)

    def nrm(k, shape, std=0.02):
        return (std * jax.random.normal(k, shape)).astype(jnp.float32)

    keys = iter(jax.random.split(key, 8 + 8 * L))
    params = {
        "tok_emb": nrm(next(keys), (cfg["vocab_size"], H)).at[0].set(0.0),  # padding_idx=0
        "pos_emb": nrm(next(keys), (cfg["max_position_embeddings"], H)),
        "type_emb": nrm(next(keys), (cfg["type_vocab_size"], H)),
        "emb_ln_g": jnp.ones((1, H), jnp.float32),
        "emb_ln_b": jnp.zeros((1, H), jnp.float32),
        "pool_w": nrm(next(keys), (H, H)).astype(jnp.bfloat16),
        "pool_b": jnp.zeros((1, H), jnp.float32),
    }

    wqkv, wo, w1, w2 = [], [], [], []
    for _ in range(L):
        wq = nrm(next(keys), (H, H)) * scale   # fold 1/sqrt(head_dim) into Q columns
        wk = nrm(next(keys), (H, H))
        wv = nrm(next(keys), (H, H))
        wqkv.append(jnp.concatenate([wq, wk, wv], axis=1))   # (H, 3H) fused QKV
        wo.append(nrm(next(keys), (H, H)))
        w1.append(nrm(next(keys), (H, I)))
        w2.append(nrm(next(keys), (I, H)))

    params["stacked"] = {
        "wqkv": jnp.stack(wqkv).astype(jnp.bfloat16),             # (L, H, 3H)
        "bqkv": jnp.zeros((L, 1, 3 * H), jnp.float32),
        "wo": jnp.stack(wo).astype(jnp.bfloat16),                 # (L, H, H)
        "bo": jnp.zeros((L, 1, H), jnp.float32),
        "ln1_g": jnp.ones((L, 1, H), jnp.float32),
        "ln1_b": jnp.zeros((L, 1, H), jnp.float32),
        "w1": jnp.stack(w1).astype(jnp.bfloat16),                 # (L, H, I)
        "b1": jnp.zeros((L, 1, I), jnp.float32),
        "w2": jnp.stack(w2).astype(jnp.bfloat16),                 # (L, I, H)
        "b2": jnp.zeros((L, 1, H), jnp.float32),
        "ln2_g": jnp.ones((L, 1, H), jnp.float32),
        "ln2_b": jnp.zeros((L, 1, H), jnp.float32),
    }
    return params


# --------------------------------- main ----------------------------------------

if __name__ == "__main__":
    cfg = CONFIG
    B, S = 2, 8

    key = jax.random.PRNGKey(0)
    params = init_params(key, cfg)

    kid, _ = jax.random.split(jax.random.fold_in(key, 123))
    input_ids = jax.random.randint(kid, (B, S), 1, cfg["vocab_size"]).astype(jnp.int32)
    # mark last two positions as padding
    input_ids = input_ids.at[:, S - 2:].set(0)
    attention_mask = jnp.ones((B, S), jnp.float32).at[:, S - 2:].set(0.0)
    token_type_ids = jnp.zeros((B, S), jnp.int32)

    fwd = jax.jit(functools.partial(bert_pallas_forward, cfg=cfg))
    x, o = fwd(params, input_ids, attention_mask, token_type_ids)
    jax.block_until_ready((x, o))

    assert x.shape == (B, S, cfg["hidden_size"])
    assert o.shape == (B, cfg["hidden_size"])
    print("KERNEL_OK")
</pallas_src>

<mosaic_0001>
module attributes {stable_mosaic.version = 11 : i64} {
  func.func @bert_fused_kernel(%arg0: i32, %arg1: memref<1x1x8xf32, #tpu.memory_space<vmem>>, %arg2: memref<8x32xf32, #tpu.memory_space<vmem>>, %arg3: memref<1x32xf32, #tpu.memory_space<vmem>>, %arg4: memref<1x32xf32, #tpu.memory_space<vmem>>, %arg5: memref<2x32x96xbf16, #tpu.memory_space<vmem>>, %arg6: memref<2x1x96xf32, #tpu.memory_space<vmem>>, %arg7: memref<2x32x32xbf16, #tpu.memory_space<vmem>>, %arg8: memref<2x1x32xf32, #tpu.memory_space<vmem>>, %arg9: memref<2x1x32xf32, #tpu.memory_space<vmem>>, %arg10: memref<2x1x32xf32, #tpu.memory_space<vmem>>, %arg11: memref<2x32x64xbf16, #tpu.memory_space<vmem>>, %arg12: memref<2x1x64xf32, #tpu.memory_space<vmem>>, %arg13: memref<2x64x32xbf16, #tpu.memory_space<vmem>>, %arg14: memref<2x1x32xf32, #tpu.memory_space<vmem>>, %arg15: memref<2x1x32xf32, #tpu.memory_space<vmem>>, %arg16: memref<2x1x32xf32, #tpu.memory_space<vmem>>, %arg17: memref<32x32xbf16, #tpu.memory_space<vmem>>, %arg18: memref<1x32xf32, #tpu.memory_space<vmem>>, %arg19: memref<8x32xf32, #tpu.memory_space<vmem>>, %arg20: memref<1x1x32xf32, #tpu.memory_space<vmem>>) attributes {dimension_semantics = [#tpu.dimension_semantics<parallel>], iteration_bounds = array<i64: 2>, scalar_prefetch = 0 : i64, scratch_operands = 0 : i64, tpu.core_type = #tpu.core_type<tc>, window_params = [{transform_indices = @transform_0, window_bounds = array<i64: 1, 1, 8>}, {transform_indices = @transform_1, window_bounds = array<i64: 8, 32>}, {pipeline_mode = #tpu.pipeline_mode<synchronous>, transform_indices = @transform_2, window_bounds = array<i64: 1, 32>}, {pipeline_mode = #tpu.pipeline_mode<synchronous>, transform_indices = @transform_3, window_bounds = array<i64: 1, 32>}, {pipeline_mode = #tpu.pipeline_mode<synchronous>, transform_indices = @transform_4, window_bounds = array<i64: 2, 32, 96>}, {pipeline_mode = #tpu.pipeline_mode<synchronous>, transform_indices = @transform_5, window_bounds = array<i64: 2, 1, 96>}, {pipeline_mode = #tpu.pipeline_mode<synchronous>, transform_indices = @transform_6, window_bounds = array<i64: 2, 32, 32>}, {pipeline_mode = #tpu.pipeline_mode<synchronous>, transform_indices = @transform_7, window_bounds = array<i64: 2, 1, 32>}, {pipeline_mode = #tpu.pipeline_mode<synchronous>, transform_indices = @transform_8, window_bounds = array<i64: 2, 1, 32>}, {pipeline_mode = #tpu.pipeline_mode<synchronous>, transform_indices = @transform_9, window_bounds = array<i64: 2, 1, 32>}, {pipeline_mode = #tpu.pipeline_mode<synchronous>, transform_indices = @transform_10, window_bounds = array<i64: 2, 32, 64>}, {pipeline_mode = #tpu.pipeline_mode<synchronous>, transform_indices = @transform_11, window_bounds = array<i64: 2, 1, 64>}, {pipeline_mode = #tpu.pipeline_mode<synchronous>, transform_indices = @transform_12, window_bounds = array<i64: 2, 64, 32>}, {pipeline_mode = #tpu.pipeline_mode<synchronous>, transform_indices = @transform_13, window_bounds = array<i64: 2, 1, 32>}, {pipeline_mode = #tpu.pipeline_mode<synchronous>, transform_indices = @transform_14, window_bounds = array<i64: 2, 1, 32>}, {pipeline_mode = #tpu.pipeline_mode<synchronous>, transform_indices = @transform_15, window_bounds = array<i64: 2, 1, 32>}, {pipeline_mode = #tpu.pipeline_mode<synchronous>, transform_indices = @transform_16, window_bounds = array<i64: 32, 32>}, {pipeline_mode = #tpu.pipeline_mode<synchronous>, transform_indices = @transform_17, window_bounds = array<i64: 1, 32>}, {transform_indices = @transform_18, window_bounds = array<i64: 8, 32>}, {transform_indices = @transform_19, window_bounds = array<i64: 1, 1, 32>}]} {
    %c0 = arith.constant 0 : index
    %c0_0 = arith.constant 0 : index
    %c0_1 = arith.constant 0 : index
    %0 = vector.load %arg1[%c0, %c0_0, %c0_1] : memref<1x1x8xf32, #tpu.memory_space<vmem>>, vector<1x1x8xf32>
    %1 = vector.shape_cast %0 : vector<1x1x8xf32> to vector<1x8xf32>
    %cst = arith.constant 5.000000e-01 : f32
    %2 = vector.broadcast %cst : f32 to vector<1x8xf32>
    %3 = arith.cmpf ogt, %1, %2 : vector<1x8xf32>
    %cst_2 = arith.constant 0.000000e+00 : f32
    %cst_3 = arith.constant -1.000000e+09 : f32
    %4 = vector.broadcast %cst_2 : f32 to vector<1x8xf32>
    %5 = vector.broadcast %cst_3 : f32 to vector<1x8xf32>
    %6 = arith.select %3, %4, %5 : vector<1x8xi1>, vector<1x8xf32>
    %c0_4 = arith.constant 0 : index
    %c0_5 = arith.constant 0 : index
    %7 = vector.load %arg2[%c0_4, %c0_5] : memref<8x32xf32, #tpu.memory_space<vmem>>, vector<8x32xf32>
    %c0_6 = arith.constant 0 : index
    %c0_7 = arith.constant 0 : index
    %8 = vector.load %arg3[%c0_6, %c0_7] : memref<1x32xf32, #tpu.memory_space<vmem>>, vector<1x32xf32>
    %c0_8 = arith.constant 0 : index
    %c0_9 = arith.constant 0 : index
    %9 = vector.load %arg4[%c0_8, %c0_9] : memref<1x32xf32, #tpu.memory_space<vmem>>, vector<1x32xf32>
    %cst_10 = arith.constant dense<0.000000e+00> : vector<8xf32>
    %10 = vector.multi_reduction <add>, %7, %cst_10 [1] : vector<8x32xf32> to vector<8xf32>
    %11 = vector.shape_cast %10 : vector<8xf32> to vector<8x1xf32>
    %cst_11 = arith.constant 3.200000e+01 : f32
    %12 = vector.broadcast %cst_11 : f32 to vector<8x1xf32>
    %13 = arith.divf %11, %12 : vector<8x1xf32>
    %14 = vector.broadcast %13 : vector<8x1xf32> to vector<8x32xf32>
    %15 = arith.subf %7, %14 : vector<8x32xf32>
    %16 = arith.mulf %15, %15 : vector<8x32xf32>
    %cst_12 = arith.constant dense<0.000000e+00> : vector<8xf32>
    %17 = vector.multi_reduction <add>, %16, %cst_12 [1] : vector<8x32xf32> to vector<8xf32>
    %18 = vector.shape_cast %17 : vector<8xf32> to vector<8x1xf32>
    %cst_13 = arith.constant 3.200000e+01 : f32
    %19 = vector.broadcast %cst_13 : f32 to vector<8x1xf32>
    %20 = arith.divf %18, %19 : vector<8x1xf32>
    %21 = vector.broadcast %13 : vector<8x1xf32> to vector<8x32xf32>
    %22 = arith.subf %7, %21 : vector<8x32xf32>
    %cst_14 = arith.constant 9.99999996E-13 : f32
    %23 = vector.broadcast %cst_14 : f32 to vector<8x1xf32>
    %24 = arith.addf %20, %23 : vector<8x1xf32>
    %25 = math.rsqrt %24 : vector<8x1xf32>
    %26 = vector.broadcast %25 : vector<8x1xf32> to vector<8x32xf32>
    %27 = arith.mulf %22, %26 : vector<8x32xf32>
    %28 = vector.broadcast %8 : vector<1x32xf32> to vector<8x32xf32>
    %29 = arith.mulf %27, %28 : vector<8x32xf32>
    %30 = vector.broadcast %9 : vector<1x32xf32> to vector<8x32xf32>
    %31 = arith.addf %29, %30 : vector<8x32xf32>
    %c0_i32 = arith.constant 0 : i32
    %32 = arith.truncf %31 : vector<8x32xf32> to vector<8x32xbf16>
    %33 = arith.index_cast %c0_i32 : i32 to index
    %c0_15 = arith.constant 0 : index
    %c0_16 = arith.constant 0 : index
    %34 = vector.load %arg5[%33, %c0_15, %c0_16] : memref<2x32x96xbf16, #tpu.memory_space<vmem>>, vector<1x32x96xbf16>
    %35 = vector.shape_cast %34 : vector<1x32x96xbf16> to vector<32x96xbf16>
    %cst_17 = arith.constant dense<0.000000e+00> : vector<8x96xf32>
    %36 = tpu.matmul %32, %35, %cst_17 {dimension_numbers = #tpu.dot_dimension_numbers<[1], [0], [0], [1], [0, 0, 1, 1], [], []>} : vector<8x32xbf16>, vector<32x96xbf16>, vector<8x96xf32> -> vector<8x96xf32>
    %37 = arith.index_cast %c0_i32 : i32 to index
    %c0_18 = arith.constant 0 : index
    %c0_19 = arith.constant 0 : index
    %38 = vector.load %arg6[%37, %c0_18, %c0_19] : memref<2x1x96xf32, #tpu.memory_space<vmem>>, vector<1x1x96xf32>
    %39 = vector.shape_cast %38 : vector<1x1x96xf32> to vector<1x96xf32>
    %40 = vector.broadcast %39 : vector<1x96xf32> to vector<8x96xf32>
    %41 = arith.addf %36, %40 : vector<8x96xf32>
    %42 = arith.index_cast %c0_i32 : i32 to index
    %c0_20 = arith.constant 0 : index
    %c0_21 = arith.constant 0 : index
    %43 = vector.load %arg7[%42, %c0_20, %c0_21] : memref<2x32x32xbf16, #tpu.memory_space<vmem>>, vector<1x32x32xbf16>
    %44 = vector.shape_cast %43 : vector<1x32x32xbf16> to vector<32x32xbf16>
    %45 = vector.extract_strided_slice %41 {offsets = [0, 0], sizes = [8, 8], strides = [1, 1]} : vector<8x96xf32> to vector<8x8xf32>
    %46 = arith.truncf %45 : vector<8x8xf32> to vector<8x8xbf16>
    %47 = vector.extract_strided_slice %41 {offsets = [0, 32], sizes = [8, 8], strides = [1, 1]} : vector<8x96xf32> to vector<8x8xf32>
    %48 = arith.truncf %47 : vector<8x8xf32> to vector<8x8xbf16>
    %49 = vector.extract_strided_slice %41 {offsets = [0, 64], sizes = [8, 8], strides = [1, 1]} : vector<8x96xf32> to vector<8x8xf32>
    %50 = arith.truncf %49 : vector<8x8xf32> to vector<8x8xbf16>
    %cst_22 = arith.constant dense<0.000000e+00> : vector<8x8xf32>
    %51 = tpu.matmul %46, %48, %cst_22 {dimension_numbers = #tpu.dot_dimension_numbers<[1], [1], [0], [0], [0, 0, 1, 0], [], []>} : vector<8x8xbf16>, vector<8x8xbf16>, vector<8x8xf32> -> vector<8x8xf32>
    %52 = vector.broadcast %6 : vector<1x8xf32> to vector<8x8xf32>
    %53 = arith.addf %51, %52 : vector<8x8xf32>
    %cst_23 = arith.constant dense<0xFF800000> : vector<8xf32>
    %54 = vector.multi_reduction <maximumf>, %53, %cst_23 [1] : vector<8x8xf32> to vector<8xf32>
    %55 = vector.shape_cast %54 : vector<8xf32> to vector<8x1xf32>
    %56 = vector.broadcast %55 : vector<8x1xf32> to vector<8x8xf32>
    %57 = arith.subf %53, %56 : vector<8x8xf32>
    %58 = math.exp %57 : vector<8x8xf32>
    %cst_24 = arith.constant dense<0.000000e+00> : vector<8xf32>
    %59 = vector.multi_reduction <add>, %58, %cst_24 [1] : vector<8x8xf32> to vector<8xf32>
    %60 = vector.shape_cast %59 : vector<8xf32> to vector<8x1xf32>
    %61 = tpu.reciprocal %60 {approx = true} : vector<8x1xf32> -> vector<8x1xf32>
    %62 = vector.broadcast %61 : vector<8x1xf32> to vector<8x8xf32>
    %63 = arith.mulf %58, %62 : vector<8x8xf32>
    %64 = arith.truncf %63 : vector<8x8xf32> to vector<8x8xbf16>
    %cst_25 = arith.constant dense<0.000000e+00> : vector<8x8xf32>
    %65 = tpu.matmul %64, %50, %cst_25 {dimension_numbers = #tpu.dot_dimension_numbers<[1], [0], [0], [1], [0, 0, 1, 1], [], []>} : vector<8x8xbf16>, vector<8x8xbf16>, vector<8x8xf32> -> vector<8x8xf32>
    %66 = arith.truncf %65 : vector<8x8xf32> to vector<8x8xbf16>
    %67 = vector.extract_strided_slice %44 {offsets = [0, 0], sizes = [8, 32], strides = [1, 1]} : vector<32x32xbf16> to vector<8x32xbf16>
    %cst_26 = arith.constant dense<0.000000e+00> : vector<8x32xf32>
    %68 = tpu.matmul %66, %67, %cst_26 {dimension_numbers = #tpu.dot_dimension_numbers<[1], [0], [0], [1], [0, 0, 1, 1], [], []>} : vector<8x8xbf16>, vector<8x32xbf16>, vector<8x32xf32> -> vector<8x32xf32>
    %69 = vector.extract_strided_slice %41 {offsets = [0, 8], sizes = [8, 8], strides = [1, 1]} : vector<8x96xf32> to vector<8x8xf32>
    %70 = arith.truncf %69 : vector<8x8xf32> to vector<8x8xbf16>
    %71 = vector.extract_strided_slice %41 {offsets = [0, 40], sizes = [8, 8], strides = [1, 1]} : vector<8x96xf32> to vector<8x8xf32>
    %72 = arith.truncf %71 : vector<8x8xf32> to vector<8x8xbf16>
    %73 = vector.extract_strided_slice %41 {offsets = [0, 72], sizes = [8, 8], strides = [1, 1]} : vector<8x96xf32> to vector<8x8xf32>
    %74 = arith.truncf %73 : vector<8x8xf32> to vector<8x8xbf16>
    %cst_27 = arith.constant dense<0.000000e+00> : vector<8x8xf32>
    %75 = tpu.matmul %70, %72, %cst_27 {dimension_numbers = #tpu.dot_dimension_numbers<[1], [1], [0], [0], [0, 0, 1, 0], [], []>} : vector<8x8xbf16>, vector<8x8xbf16>, vector<8x8xf32> -> vector<8x8xf32>
    %76 = vector.broadcast %6 : vector<1x8xf32> to vector<8x8xf32>
    %77 = arith.addf %75, %76 : vector<8x8xf32>
    %cst_28 = arith.constant dense<0xFF800000> : vector<8xf32>
    %78 = vector.multi_reduction <maximumf>, %77, %cst_28 [1] : vector<8x8xf32> to vector<8xf32>
    %79 = vector.shape_cast %78 : vector<8xf32> to vector<8x1xf32>
    %80 = vector.broadcast %79 : vector<8x1xf32> to vector<8x8xf32>
    %81 = arith.subf %77, %80 : vector<8x8xf32>
    %82 = math.exp %81 : vector<8x8xf32>
    %cst_29 = arith.constant dense<0.000000e+00> : vector<8xf32>
    %83 = vector.multi_reduction <add>, %82, %cst_29 [1] : vector<8x8xf32> to vector<8xf32>
    %84 = vector.shape_cast %83 : vector<8xf32> to vector<8x1xf32>
    %85 = tpu.reciprocal %84 {approx = true} : vector<8x1xf32> -> vector<8x1xf32>
    %86 = vector.broadcast %85 : vector<8x1xf32> to vector<8x8xf32>
    %87 = arith.mulf %82, %86 : vector<8x8xf32>
    %88 = arith.truncf %87 : vector<8x8xf32> to vector<8x8xbf16>
    %cst_30 = arith.constant dense<0.000000e+00> : vector<8x8xf32>
    %89 = tpu.matmul %88, %74, %cst_30 {dimension_numbers = #tpu.dot_dimension_numbers<[1], [0], [0], [1], [0, 0, 1, 1], [], []>} : vector<8x8xbf16>, vector<8x8xbf16>, vector<8x8xf32> -> vector<8x8xf32>
    %90 = arith.truncf %89 : vector<8x8xf32> to vector<8x8xbf16>
    %91 = vector.extract_strided_slice %44 {offsets = [8, 0], sizes = [8, 32], strides = [1, 1]} : vector<32x32xbf16> to vector<8x32xbf16>
    %cst_31 = arith.constant dense<0.000000e+00> : vector<8x32xf32>
    %92 = tpu.matmul %90, %91, %cst_31 {dimension_numbers = #tpu.dot_dimension_numbers<[1], [0], [0], [1], [0, 0, 1, 1], [], []>} : vector<8x8xbf16>, vector<8x32xbf16>, vector<8x32xf32> -> vector<8x32xf32>
    %93 = arith.addf %68, %92 : vector<8x32xf32>
    %94 = vector.extract_strided_slice %41 {offsets = [0, 16], sizes = [8, 8], strides = [1, 1]} : vector<8x96xf32> to vector<8x8xf32>
    %95 = arith.truncf %94 : vector<8x8xf32> to vector<8x8xbf16>
    %96 = vector.extract_strided_slice %41 {offsets = [0, 48], sizes = [8, 8], strides = [1, 1]} : vector<8x96xf32> to vector<8x8xf32>
    %97 = arith.truncf %96 : vector<8x8xf32> to vector<8x8xbf16>
    %98 = vector.extract_strided_slice %41 {offsets = [0, 80], sizes = [8, 8], strides = [1, 1]} : vector<8x96xf32> to vector<8x8xf32>
    %99 = arith.truncf %98 : vector<8x8xf32> to vector<8x8xbf16>
    %cst_32 = arith.constant dense<0.000000e+00> : vector<8x8xf32>
    %100 = tpu.matmul %95, %97, %cst_32 {dimension_numbers = #tpu.dot_dimension_numbers<[1], [1], [0], [0], [0, 0, 1, 0], [], []>} : vector<8x8xbf16>, vector<8x8xbf16>, vector<8x8xf32> -> vector<8x8xf32>
    %101 = vector.broadcast %6 : vector<1x8xf32> to vector<8x8xf32>
    %102 = arith.addf %100, %101 : vector<8x8xf32>
    %cst_33 = arith.constant dense<0xFF800000> : vector<8xf32>
    %103 = vector.multi_reduction <maximumf>, %102, %cst_33 [1] : vector<8x8xf32> to vector<8xf32>
    %104 = vector.shape_cast %103 : vector<8xf32> to vector<8x1xf32>
    %105 = vector.broadcast %104 : vector<8x1xf32> to vector<8x8xf32>
    %106 = arith.subf %102, %105 : vector<8x8xf32>
    %107 = math.exp %106 : vector<8x8xf32>
    %cst_34 = arith.constant dense<0.000000e+00> : vector<8xf32>
    %108 = vector.multi_reduction <add>, %107, %cst_34 [1] : vector<8x8xf32> to vector<8xf32>
    %109 = vector.shape_cast %108 : vector<8xf32> to vector<8x1xf32>
    %110 = tpu.reciprocal %109 {approx = true} : vector<8x1xf32> -> vector<8x1xf32>
    %111 = vector.broadcast %110 : vector<8x1xf32> to vector<8x8xf32>
    %112 = arith.mulf %107, %111 : vector<8x8xf32>
    %113 = arith.truncf %112 : vector<8x8xf32> to vector<8x8xbf16>
    %cst_35 = arith.constant dense<0.000000e+00> : vector<8x8xf32>
    %114 = tpu.matmul %113, %99, %cst_35 {dimension_numbers = #tpu.dot_dimension_numbers<[1], [0], [0], [1], [0, 0, 1, 1], [], []>} : vector<8x8xbf16>, vector<8x8xbf16>, vector<8x8xf32> -> vector<8x8xf32>
    %115 = arith.truncf %114 : vector<8x8xf32> to vector<8x8xbf16>
    %116 = vector.extract_strided_slice %44 {offsets = [16, 0], sizes = [8, 32], strides = [1, 1]} : vector<32x32xbf16> to vector<8x32xbf16>
    %cst_36 = arith.constant dense<0.000000e+00> : vector<8x32xf32>
    %117 = tpu.matmul %115, %116, %cst_36 {dimension_numbers = #tpu.dot_dimension_numbers<[1], [0], [0], [1], [0, 0, 1, 1], [], []>} : vector<8x8xbf16>, vector<8x32xbf16>, vector<8x32xf32> -> vector<8x32xf32>
    %118 = arith.addf %93, %117 : vector<8x32xf32>
    %119 = vector.extract_strided_slice %41 {offsets = [0, 24], sizes = [8, 8], strides = [1, 1]} : vector<8x96xf32> to vector<8x8xf32>
    %120 = arith.truncf %119 : vector<8x8xf32> to vector<8x8xbf16>
    %121 = vector.extract_strided_slice %41 {offsets = [0, 56], sizes = [8, 8], strides = [1, 1]} : vector<8x96xf32> to vector<8x8xf32>
    %122 = arith.truncf %121 : vector<8x8xf32> to vector<8x8xbf16>
    %123 = vector.extract_strided_slice %41 {offsets = [0, 88], sizes = [8, 8], strides = [1, 1]} : vector<8x96xf32> to vector<8x8xf32>
    %124 = arith.truncf %123 : vector<8x8xf32> to vector<8x8xbf16>
    %cst_37 = arith.constant dense<0.000000e+00> : vector<8x8xf32>
    %125 = tpu.matmul %120, %122, %cst_37 {dimension_numbers = #tpu.dot_dimension_numbers<[1], [1], [0], [0], [0, 0, 1, 0], [], []>} : vector<8x8xbf16>, vector<8x8xbf16>, vector<8x8xf32> -> vector<8x8xf32>
    %126 = vector.broadcast %6 : vector<1x8xf32> to vector<8x8xf32>
    %127 = arith.addf %125, %126 : vector<8x8xf32>
    %cst_38 = arith.constant dense<0xFF800000> : vector<8xf32>
    %128 = vector.multi_reduction <maximumf>, %127, %cst_38 [1] : vector<8x8xf32> to vector<8xf32>
    %129 = vector.shape_cast %128 : vector<8xf32> to vector<8x1xf32>
    %130 = vector.broadcast %129 : vector<8x1xf32> to vector<8x8xf32>
    %131 = arith.subf %127, %130 : vector<8x8xf32>
    %132 = math.exp %131 : vector<8x8xf32>
    %cst_39 = arith.constant dense<0.000000e+00> : vector<8xf32>
    %133 = vector.multi_reduction <add>, %132, %cst_39 [1] : vector<8x8xf32> to vector<8xf32>
    %134 = vector.shape_cast %133 : vector<8xf32> to vector<8x1xf32>
    %135 = tpu.reciprocal %134 {approx = true} : vector<8x1xf32> -> vector<8x1xf32>
    %136 = vector.broadcast %135 : vector<8x1xf32> to vector<8x8xf32>
    %137 = arith.mulf %132, %136 : vector<8x8xf32>
    %138 = arith.truncf %137 : vector<8x8xf32> to vector<8x8xbf16>
    %cst_40 = arith.constant dense<0.000000e+00> : vector<8x8xf32>
    %139 = tpu.matmul %138, %124, %cst_40 {dimension_numbers = #tpu.dot_dimension_numbers<[1], [0], [0], [1], [0, 0, 1, 1], [], []>} : vector<8x8xbf16>, vector<8x8xbf16>, vector<8x8xf32> -> vector<8x8xf32>
    %140 = arith.truncf %139 : vector<8x8xf32> to vector<8x8xbf16>
    %141 = vector.extract_strided_slice %44 {offsets = [24, 0], sizes = [8, 32], strides = [1, 1]} : vector<32x32xbf16> to vector<8x32xbf16>
    %cst_41 = arith.constant dense<0.000000e+00> : vector<8x32xf32>
    %142 = tpu.matmul %140, %141, %cst_41 {dimension_numbers = #tpu.dot_dimension_numbers<[1], [0], [0], [1], [0, 0, 1, 1], [], []>} : vector<8x8xbf16>, vector<8x32xbf16>, vector<8x32xf32> -> vector<8x32xf32>
    %143 = arith.addf %118, %142 : vector<8x32xf32>
    %144 = arith.index_cast %c0_i32 : i32 to index
    %c0_42 = arith.constant 0 : index
    %c0_43 = arith.constant 0 : index
    %145 = vector.load %arg8[%144, %c0_42, %c0_43] : memref<2x1x32xf32, #tpu.memory_space<vmem>>, vector<1x1x32xf32>
    %146 = vector.shape_cast %145 : vector<1x1x32xf32> to vector<1x32xf32>
    %147 = vector.broadcast %146 : vector<1x32xf32> to vector<8x32xf32>
    %148 = arith.addf %143, %147 : vector<8x32xf32>
    %149 = arith.addf %31, %148 : vector<8x32xf32>
    %150 = arith.index_cast %c0_i32 : i32 to index
    %c0_44 = arith.constant 0 : index
    %c0_45 = arith.constant 0 : index
    %151 = vector.load %arg9[%150, %c0_44, %c0_45] : memref<2x1x32xf32, #tpu.memory_space<vmem>>, vector<1x1x32xf32>
    %152 = vector.shape_cast %151 : vector<1x1x32xf32> to vector<1x32xf32>
    %153 = arith.index_cast %c0_i32 : i32 to index
    %c0_46 = arith.constant 0 : index
    %c0_47 = arith.constant 0 : index
    %154 = vector.load %arg10[%153, %c0_46, %c0_47] : memref<2x1x32xf32, #tpu.memory_space<vmem>>, vector<1x1x32xf32>
    %155 = vector.shape_cast %154 : vector<1x1x32xf32> to vector<1x32xf32>
    %cst_48 = arith.constant dense<0.000000e+00> : vector<8xf32>
    %156 = vector.multi_reduction <add>, %149, %cst_48 [1] : vector<8x32xf32> to vector<8xf32>
    %157 = vector.shape_cast %156 : vector<8xf32> to vector<8x1xf32>
    %cst_49 = arith.constant 3.200000e+01 : f32
    %158 = vector.broadcast %cst_49 : f32 to vector<8x1xf32>
    %159 = arith.divf %157, %158 : vector<8x1xf32>
    %160 = vector.broadcast %159 : vector<8x1xf32> to vector<8x32xf32>
    %161 = arith.subf %149, %160 : vector<8x32xf32>
    %162 = arith.mulf %161, %161 : vector<8x32xf32>
    %cst_50 = arith.constant dense<0.000000e+00> : vector<8xf32>
    %163 = vector.multi_reduction <add>, %162, %cst_50 [1] : vector<8x32xf32> to vector<8xf32>
    %164 = vector.shape_cast %163 : vector<8xf32> to vector<8x1xf32>
    %cst_51 = arith.constant 3.200000e+01 : f32
    %165 = vector.broadcast %cst_51 : f32 to vector<8x1xf32>
    %166 = arith.divf %164, %165 : vector<8x1xf32>
    %167 = vector.broadcast %159 : vector<8x1xf32> to vector<8x32xf32>
    %168 = arith.subf %149, %167 : vector<8x32xf32>
    %cst_52 = arith.constant 9.99999996E-13 : f32
    %169 = vector.broadcast %cst_52 : f32 to vector<8x1xf32>
    %170 = arith.addf %166, %169 : vector<8x1xf32>
    %171 = math.rsqrt %170 : vector<8x1xf32>
    %172 = vector.broadcast %171 : vector<8x1xf32> to vector<8x32xf32>
    %173 = arith.mulf %168, %172 : vector<8x32xf32>
    %174 = vector.broadcast %152 : vector<1x32xf32> to vector<8x32xf32>
    %175 = arith.mulf %173, %174 : vector<8x32xf32>
    %176 = vector.broadcast %155 : vector<1x32xf32> to vector<8x32xf32>
    %177 = arith.addf %175, %176 : vector<8x32xf32>
    %178 = arith.truncf %177 : vector<8x32xf32> to vector<8x32xbf16>
    %179 = arith.index_cast %c0_i32 : i32 to index
    %c0_53 = arith.constant 0 : index
    %c0_54 = arith.constant 0 : index
    %180 = vector.load %arg11[%179, %c0_53, %c0_54] : memref<2x32x64xbf16, #tpu.memory_space<vmem>>, vector<1x32x64xbf16>
    %181 = vector.shape_cast %180 : vector<1x32x64xbf16> to vector<32x64xbf16>
    %cst_55 = arith.constant dense<0.000000e+00> : vector<8x64xf32>
    %182 = tpu.matmul %178, %181, %cst_55 {dimension_numbers = #tpu.dot_dimension_numbers<[1], [0], [0], [1], [0, 0, 1, 1], [], []>} : vector<8x32xbf16>, vector<32x64xbf16>, vector<8x64xf32> -> vector<8x64xf32>
    %183 = arith.index_cast %c0_i32 : i32 to index
    %c0_56 = arith.constant 0 : index
    %c0_57 = arith.constant 0 : index
    %184 = vector.load %arg12[%183, %c0_56, %c0_57] : memref<2x1x64xf32, #tpu.memory_space<vmem>>, vector<1x1x64xf32>
    %185 = vector.shape_cast %184 : vector<1x1x64xf32> to vector<1x64xf32>
    %186 = vector.broadcast %185 : vector<1x64xf32> to vector<8x64xf32>
    %187 = arith.addf %182, %186 : vector<8x64xf32>
    %188 = arith.mulf %187, %187 : vector<8x64xf32>
    %189 = arith.mulf %187, %188 : vector<8x64xf32>
    %cst_58 = arith.constant 4.471500e-02 : f32
    %190 = vector.broadcast %cst_58 : f32 to vector<8x64xf32>
    %191 = arith.mulf %190, %189 : vector<8x64xf32>
    %192 = arith.addf %187, %191 : vector<8x64xf32>
    %cst_59 = arith.constant 0.797884583 : f32
    %193 = vector.broadcast %cst_59 : f32 to vector<8x64xf32>
    %194 = arith.mulf %193, %192 : vector<8x64xf32>
    %195 = math.tanh %194 : vector<8x64xf32>
    %cst_60 = arith.constant 1.000000e+00 : f32
    %196 = vector.broadcast %cst_60 : f32 to vector<8x64xf32>
    %197 = arith.addf %196, %195 : vector<8x64xf32>
    %cst_61 = arith.constant 5.000000e-01 : f32
    %198 = vector.broadcast %cst_61 : f32 to vector<8x64xf32>
    %199 = arith.mulf %198, %197 : vector<8x64xf32>
    %200 = arith.mulf %187, %199 : vector<8x64xf32>
    %201 = arith.truncf %200 : vector<8x64xf32> to vector<8x64xbf16>
    %202 = arith.index_cast %c0_i32 : i32 to index
    %c0_62 = arith.constant 0 : index
    %c0_63 = arith.constant 0 : index
    %203 = vector.load %arg13[%202, %c0_62, %c0_63] : memref<2x64x32xbf16, #tpu.memory_space<vmem>>, vector<1x64x32xbf16>
    %204 = vector.shape_cast %203 : vector<1x64x32xbf16> to vector<64x32xbf16>
    %cst_64 = arith.constant dense<0.000000e+00> : vector<8x32xf32>
    %205 = tpu.matmul %201, %204, %cst_64 {dimension_numbers = #tpu.dot_dimension_numbers<[1], [0], [0], [1], [0, 0, 1, 1], [], []>} : vector<8x64xbf16>, vector<64x32xbf16>, vector<8x32xf32> -> vector<8x32xf32>
    %206 = arith.index_cast %c0_i32 : i32 to index
    %c0_65 = arith.constant 0 : index
    %c0_66 = arith.constant 0 : index
    %207 = vector.load %arg14[%206, %c0_65, %c0_66] : memref<2x1x32xf32, #tpu.memory_space<vmem>>, vector<1x1x32xf32>
    %208 = vector.shape_cast %207 : vector<1x1x32xf32> to vector<1x32xf32>
    %209 = vector.broadcast %208 : vector<1x32xf32> to vector<8x32xf32>
    %210 = arith.addf %205, %209 : vector<8x32xf32>
    %211 = arith.addf %177, %210 : vector<8x32xf32>
    %212 = arith.index_cast %c0_i32 : i32 to index
    %c0_67 = arith.constant 0 : index
    %c0_68 = arith.constant 0 : index
    %213 = vector.load %arg15[%212, %c0_67, %c0_68] : memref<2x1x32xf32, #tpu.memory_space<vmem>>, vector<1x1x32xf32>
    %214 = vector.shape_cast %213 : vector<1x1x32xf32> to vector<1x32xf32>
    %215 = arith.index_cast %c0_i32 : i32 to index
    %c0_69 = arith.constant 0 : index
    %c0_70 = arith.constant 0 : index
    %216 = vector.load %arg16[%215, %c0_69, %c0_70] : memref<2x1x32xf32, #tpu.memory_space<vmem>>, vector<1x1x32xf32>
    %217 = vector.shape_cast %216 : vector<1x1x32xf32> to vector<1x32xf32>
    %cst_71 = arith.constant dense<0.000000e+00> : vector<8xf32>
    %218 = vector.multi_reduction <add>, %211, %cst_71 [1] : vector<8x32xf32> to vector<8xf32>
    %219 = vector.shape_cast %218 : vector<8xf32> to vector<8x1xf32>
    %cst_72 = arith.constant 3.200000e+01 : f32
    %220 = vector.broadcast %cst_72 : f32 to vector<8x1xf32>
    %221 = arith.divf %219, %220 : vector<8x1xf32>
    %222 = vector.broadcast %221 : vector<8x1xf32> to vector<8x32xf32>
    %223 = arith.subf %211, %222 : vector<8x32xf32>
    %224 = arith.mulf %223, %223 : vector<8x32xf32>
    %cst_73 = arith.constant dense<0.000000e+00> : vector<8xf32>
    %225 = vector.multi_reduction <add>, %224, %cst_73 [1] : vector<8x32xf32> to vector<8xf32>
    %226 = vector.shape_cast %225 : vector<8xf32> to vector<8x1xf32>
    %cst_74 = arith.constant 3.200000e+01 : f32
    %227 = vector.broadcast %cst_74 : f32 to vector<8x1xf32>
    %228 = arith.divf %226, %227 : vector<8x1xf32>
    %229 = vector.broadcast %221 : vector<8x1xf32> to vector<8x32xf32>
    %230 = arith.subf %211, %229 : vector<8x32xf32>
    %cst_75 = arith.constant 9.99999996E-13 : f32
    %231 = vector.broadcast %cst_75 : f32 to vector<8x1xf32>
    %232 = arith.addf %228, %231 : vector<8x1xf32>
    %233 = math.rsqrt %232 : vector<8x1xf32>
    %234 = vector.broadcast %233 : vector<8x1xf32> to vector<8x32xf32>
    %235 = arith.mulf %230, %234 : vector<8x32xf32>
    %236 = vector.broadcast %214 : vector<1x32xf32> to vector<8x32xf32>
    %237 = arith.mulf %235, %236 : vector<8x32xf32>
    %238 = vector.broadcast %217 : vector<1x32xf32> to vector<8x32xf32>
    %239 = arith.addf %237, %238 : vector<8x32xf32>
    %c1_i32 = arith.constant 1 : i32
    %240 = arith.truncf %239 : vector<8x32xf32> to vector<8x32xbf16>
    %241 = arith.index_cast %c1_i32 : i32 to index
    %c0_76 = arith.constant 0 : index
    %c0_77 = arith.constant 0 : index
    %242 = vector.load %arg5[%241, %c0_76, %c0_77] : memref<2x32x96xbf16, #tpu.memory_space<vmem>>, vector<1x32x96xbf16>
    %243 = vector.shape_cast %242 : vector<1x32x96xbf16> to vector<32x96xbf16>
    %cst_78 = arith.constant dense<0.000000e+00> : vector<8x96xf32>
    %244 = tpu.matmul %240, %243, %cst_78 {dimension_numbers = #tpu.dot_dimension_numbers<[1], [0], [0], [1], [0, 0, 1, 1], [], []>} : vector<8x32xbf16>, vector<32x96xbf16>, vector<8x96xf32> -> vector<8x96xf32>
    %245 = arith.index_cast %c1_i32 : i32 to index
    %c0_79 = arith.constant 0 : index
    %c0_80 = arith.constant 0 : index
    %246 = vector.load %arg6[%245, %c0_79, %c0_80] : memref<2x1x96xf32, #tpu.memory_space<vmem>>, vector<1x1x96xf32>
    %247 = vector.shape_cast %246 : vector<1x1x96xf32> to vector<1x96xf32>
    %248 = vector.broadcast %247 : vector<1x96xf32> to vector<8x96xf32>
    %249 = arith.addf %244, %248 : vector<8x96xf32>
    %250 = arith.index_cast %c1_i32 : i32 to index
    %c0_81 = arith.constant 0 : index
    %c0_82 = arith.constant 0 : index
    %251 = vector.load %arg7[%250, %c0_81, %c0_82] : memref<2x32x32xbf16, #tpu.memory_space<vmem>>, vector<1x32x32xbf16>
    %252 = vector.shape_cast %251 : vector<1x32x32xbf16> to vector<32x32xbf16>
    %253 = vector.extract_strided_slice %249 {offsets = [0, 0], sizes = [8, 8], strides = [1, 1]} : vector<8x96xf32> to vector<8x8xf32>
    %254 = arith.truncf %253 : vector<8x8xf32> to vector<8x8xbf16>
    %255 = vector.extract_strided_slice %249 {offsets = [0, 32], sizes = [8, 8], strides = [1, 1]} : vector<8x96xf32> to vector<8x8xf32>
    %256 = arith.truncf %255 : vector<8x8xf32> to vector<8x8xbf16>
    %257 = vector.extract_strided_slice %249 {offsets = [0, 64], sizes = [8, 8], strides = [1, 1]} : vector<8x96xf32> to vector<8x8xf32>
    %258 = arith.truncf %257 : vector<8x8xf32> to vector<8x8xbf16>
    %cst_83 = arith.constant dense<0.000000e+00> : vector<8x8xf32>
    %259 = tpu.matmul %254, %256, %cst_83 {dimension_numbers = #tpu.dot_dimension_numbers<[1], [1], [0], [0], [0, 0, 1, 0], [], []>} : vector<8x8xbf16>, vector<8x8xbf16>, vector<8x8xf32> -> vector<8x8xf32>
    %260 = vector.broadcast %6 : vector<1x8xf32> to vector<8x8xf32>
    %261 = arith.addf %259, %260 : vector<8x8xf32>
    %cst_84 = arith.constant dense<0xFF800000> : vector<8xf32>
    %262 = vector.multi_reduction <maximumf>, %261, %cst_84 [1] : vector<8x8xf32> to vector<8xf32>
    %263 = vector.shape_cast %262 : vector<8xf32> to vector<8x1xf32>
    %264 = vector.broadcast %263 : vector<8x1xf32> to vector<8x8xf32>
    %265 = arith.subf %261, %264 : vector<8x8xf32>
    %266 = math.exp %265 : vector<8x8xf32>
    %cst_85 = arith.constant dense<0.000000e+00> : vector<8xf32>
    %267 = vector.multi_reduction <add>, %266, %cst_85 [1] : vector<8x8xf32> to vector<8xf32>
    %268 = vector.shape_cast %267 : vector<8xf32> to vector<8x1xf32>
    %269 = tpu.reciprocal %268 {approx = true} : vector<8x1xf32> -> vector<8x1xf32>
    %270 = vector.broadcast %269 : vector<8x1xf32> to vector<8x8xf32>
    %271 = arith.mulf %266, %270 : vector<8x8xf32>
    %272 = arith.truncf %271 : vector<8x8xf32> to vector<8x8xbf16>
    %cst_86 = arith.constant dense<0.000000e+00> : vector<8x8xf32>
    %273 = tpu.matmul %272, %258, %cst_86 {dimension_numbers = #tpu.dot_dimension_numbers<[1], [0], [0], [1], [0, 0, 1, 1], [], []>} : vector<8x8xbf16>, vector<8x8xbf16>, vector<8x8xf32> -> vector<8x8xf32>
    %274 = arith.truncf %273 : vector<8x8xf32> to vector<8x8xbf16>
    %275 = vector.extract_strided_slice %252 {offsets = [0, 0], sizes = [8, 32], strides = [1, 1]} : vector<32x32xbf16> to vector<8x32xbf16>
    %cst_87 = arith.constant dense<0.000000e+00> : vector<8x32xf32>
    %276 = tpu.matmul %274, %275, %cst_87 {dimension_numbers = #tpu.dot_dimension_numbers<[1], [0], [0], [1], [0, 0, 1, 1], [], []>} : vector<8x8xbf16>, vector<8x32xbf16>, vector<8x32xf32> -> vector<8x32xf32>
    %277 = vector.extract_strided_slice %249 {offsets = [0, 8], sizes = [8, 8], strides = [1, 1]} : vector<8x96xf32> to vector<8x8xf32>
    %278 = arith.truncf %277 : vector<8x8xf32> to vector<8x8xbf16>
    %279 = vector.extract_strided_slice %249 {offsets = [0, 40], sizes = [8, 8], strides = [1, 1]} : vector<8x96xf32> to vector<8x8xf32>
    %280 = arith.truncf %279 : vector<8x8xf32> to vector<8x8xbf16>
    %281 = vector.extract_strided_slice %249 {offsets = [0, 72], sizes = [8, 8], strides = [1, 1]} : vector<8x96xf32> to vector<8x8xf32>
    %282 = arith.truncf %281 : vector<8x8xf32> to vector<8x8xbf16>
    %cst_88 = arith.constant dense<0.000000e+00> : vector<8x8xf32>
    %283 = tpu.matmul %278, %280, %cst_88 {dimension_numbers = #tpu.dot_dimension_numbers<[1], [1], [0], [0], [0, 0, 1, 0], [], []>} : vector<8x8xbf16>, vector<8x8xbf16>, vector<8x8xf32> -> vector<8x8xf32>
    %284 = vector.broadcast %6 : vector<1x8xf32> to vector<8x8xf32>
    %285 = arith.addf %283, %284 : vector<8x8xf32>
    %cst_89 = arith.constant dense<0xFF800000> : vector<8xf32>
    %286 = vector.multi_reduction <maximumf>, %285, %cst_89 [1] : vector<8x8xf32> to vector<8xf32>
    %287 = vector.shape_cast %286 : vector<8xf32> to vector<8x1xf32>
    %288 = vector.broadcast %287 : vector<8x1xf32> to vector<8x8xf32>
    %289 = arith.subf %285, %288 : vector<8x8xf32>
    %290 = math.exp %289 : vector<8x8xf32>
    %cst_90 = arith.constant dense<0.000000e+00> : vector<8xf32>
    %291 = vector.multi_reduction <add>, %290, %cst_90 [1] : vector<8x8xf32> to vector<8xf32>
    %292 = vector.shape_cast %291 : vector<8xf32> to vector<8x1xf32>
    %293 = tpu.reciprocal %292 {approx = true} : vector<8x1xf32> -> vector<8x1xf32>
    %294 = vector.broadcast %293 : vector<8x1xf32> to vector<8x8xf32>
    %295 = arith.mulf %290, %294 : vector<8x8xf32>
    %296 = arith.truncf %295 : vector<8x8xf32> to vector<8x8xbf16>
    %cst_91 = arith.constant dense<0.000000e+00> : vector<8x8xf32>
    %297 = tpu.matmul %296, %282, %cst_91 {dimension_numbers = #tpu.dot_dimension_numbers<[1], [0], [0], [1], [0, 0, 1, 1], [], []>} : vector<8x8xbf16>, vector<8x8xbf16>, vector<8x8xf32> -> vector<8x8xf32>
    %298 = arith.truncf %297 : vector<8x8xf32> to vector<8x8xbf16>
    %299 = vector.extract_strided_slice %252 {offsets = [8, 0], sizes = [8, 32], strides = [1, 1]} : vector<32x32xbf16> to vector<8x32xbf16>
    %cst_92 = arith.constant dense<0.000000e+00> : vector<8x32xf32>
    %300 = tpu.matmul %298, %299, %cst_92 {dimension_numbers = #tpu.dot_dimension_numbers<[1], [0], [0], [1], [0, 0, 1, 1], [], []>} : vector<8x8xbf16>, vector<8x32xbf16>, vector<8x32xf32> -> vector<8x32xf32>
    %301 = arith.addf %276, %300 : vector<8x32xf32>
    %302 = vector.extract_strided_slice %249 {offsets = [0, 16], sizes = [8, 8], strides = [1, 1]} : vector<8x96xf32> to vector<8x8xf32>
    %303 = arith.truncf %302 : vector<8x8xf32> to vector<8x8xbf16>
    %304 = vector.extract_strided_slice %249 {offsets = [0, 48], sizes = [8, 8], strides = [1, 1]} : vector<8x96xf32> to vector<8x8xf32>
    %305 = arith.truncf %304 : vector<8x8xf32> to vector<8x8xbf16>
    %306 = vector.extract_strided_slice %249 {offsets = [0, 80], sizes = [8, 8], strides = [1, 1]} : vector<8x96xf32> to vector<8x8xf32>
    %307 = arith.truncf %306 : vector<8x8xf32> to vector<8x8xbf16>
    %cst_93 = arith.constant dense<0.000000e+00> : vector<8x8xf32>
    %308 = tpu.matmul %303, %305, %cst_93 {dimension_numbers = #tpu.dot_dimension_numbers<[1], [1], [0], [0], [0, 0, 1, 0], [], []>} : vector<8x8xbf16>, vector<8x8xbf16>, vector<8x8xf32> -> vector<8x8xf32>
    %309 = vector.broadcast %6 : vector<1x8xf32> to vector<8x8xf32>
    %310 = arith.addf %308, %309 : vector<8x8xf32>
    %cst_94 = arith.constant dense<0xFF800000> : vector<8xf32>
    %311 = vector.multi_reduction <maximumf>, %310, %cst_94 [1] : vector<8x8xf32> to vector<8xf32>
    %312 = vector.shape_cast %311 : vector<8xf32> to vector<8x1xf32>
    %313 = vector.broadcast %312 : vector<8x1xf32> to vector<8x8xf32>
    %314 = arith.subf %310, %313 : vector<8x8xf32>
    %315 = math.exp %314 : vector<8x8xf32>
    %cst_95 = arith.constant dense<0.000000e+00> : vector<8xf32>
    %316 = vector.multi_reduction <add>, %315, %cst_95 [1] : vector<8x8xf32> to vector<8xf32>
    %317 = vector.shape_cast %316 : vector<8xf32> to vector<8x1xf32>
    %318 = tpu.reciprocal %317 {approx = true} : vector<8x1xf32> -> vector<8x1xf32>
    %319 = vector.broadcast %318 : vector<8x1xf32> to vector<8x8xf32>
    %320 = arith.mulf %315, %319 : vector<8x8xf32>
    %321 = arith.truncf %320 : vector<8x8xf32> to vector<8x8xbf16>
    %cst_96 = arith.constant dense<0.000000e+00> : vector<8x8xf32>
    %322 = tpu.matmul %321, %307, %cst_96 {dimension_numbers = #tpu.dot_dimension_numbers<[1], [0], [0], [1], [0, 0, 1, 1], [], []>} : vector<8x8xbf16>, vector<8x8xbf16>, vector<8x8xf32> -> vector<8x8xf32>
    %323 = arith.truncf %322 : vector<8x8xf32> to vector<8x8xbf16>
    %324 = vector.extract_strided_slice %252 {offsets = [16, 0], sizes = [8, 32], strides = [1, 1]} : vector<32x32xbf16> to vector<8x32xbf16>
    %cst_97 = arith.constant dense<0.000000e+00> : vector<8x32xf32>
    %325 = tpu.matmul %323, %324, %cst_97 {dimension_numbers = #tpu.dot_dimension_numbers<[1], [0], [0], [1], [0, 0, 1, 1], [], []>} : vector<8x8xbf16>, vector<8x32xbf16>, vector<8x32xf32> -> vector<8x32xf32>
    %326 = arith.addf %301, %325 : vector<8x32xf32>
    %327 = vector.extract_strided_slice %249 {offsets = [0, 24], sizes = [8, 8], strides = [1, 1]} : vector<8x96xf32> to vector<8x8xf32>
    %328 = arith.truncf %327 : vector<8x8xf32> to vector<8x8xbf16>
    %329 = vector.extract_strided_slice %249 {offsets = [0, 56], sizes = [8, 8], strides = [1, 1]} : vector<8x96xf32> to vector<8x8xf32>
    %330 = arith.truncf %329 : vector<8x8xf32> to vector<8x8xbf16>
    %331 = vector.extract_strided_slice %249 {offsets = [0, 88], sizes = [8, 8], strides = [1, 1]} : vector<8x96xf32> to vector<8x8xf32>
    %332 = arith.truncf %331 : vector<8x8xf32> to vector<8x8xbf16>
    %cst_98 = arith.constant dense<0.000000e+00> : vector<8x8xf32>
    %333 = tpu.matmul %328, %330, %cst_98 {dimension_numbers = #tpu.dot_dimension_numbers<[1], [1], [0], [0], [0, 0, 1, 0], [], []>} : vector<8x8xbf16>, vector<8x8xbf16>, vector<8x8xf32> -> vector<8x8xf32>
    %334 = vector.broadcast %6 : vector<1x8xf32> to vector<8x8xf32>
    %335 = arith.addf %333, %334 : vector<8x8xf32>
    %cst_99 = arith.constant dense<0xFF800000> : vector<8xf32>
    %336 = vector.multi_reduction <maximumf>, %335, %cst_99 [1] : vector<8x8xf32> to vector<8xf32>
    %337 = vector.shape_cast %336 : vector<8xf32> to vector<8x1xf32>
    %338 = vector.broadcast %337 : vector<8x1xf32> to vector<8x8xf32>
    %339 = arith.subf %335, %338 : vector<8x8xf32>
    %340 = math.exp %339 : vector<8x8xf32>
    %cst_100 = arith.constant dense<0.000000e+00> : vector<8xf32>
    %341 = vector.multi_reduction <add>, %340, %cst_100 [1] : vector<8x8xf32> to vector<8xf32>
    %342 = vector.shape_cast %341 : vector<8xf32> to vector<8x1xf32>
    %343 = tpu.reciprocal %342 {approx = true} : vector<8x1xf32> -> vector<8x1xf32>
    %344 = vector.broadcast %343 : vector<8x1xf32> to vector<8x8xf32>
    %345 = arith.mulf %340, %344 : vector<8x8xf32>
    %346 = arith.truncf %345 : vector<8x8xf32> to vector<8x8xbf16>
    %cst_101 = arith.constant dense<0.000000e+00> : vector<8x8xf32>
    %347 = tpu.matmul %346, %332, %cst_101 {dimension_numbers = #tpu.dot_dimension_numbers<[1], [0], [0], [1], [0, 0, 1, 1], [], []>} : vector<8x8xbf16>, vector<8x8xbf16>, vector<8x8xf32> -> vector<8x8xf32>
    %348 = arith.truncf %347 : vector<8x8xf32> to vector<8x8xbf16>
    %349 = vector.extract_strided_slice %252 {offsets = [24, 0], sizes = [8, 32], strides = [1, 1]} : vector<32x32xbf16> to vector<8x32xbf16>
    %cst_102 = arith.constant dense<0.000000e+00> : vector<8x32xf32>
    %350 = tpu.matmul %348, %349, %cst_102 {dimension_numbers = #tpu.dot_dimension_numbers<[1], [0], [0], [1], [0, 0, 1, 1], [], []>} : vector<8x8xbf16>, vector<8x32xbf16>, vector<8x32xf32> -> vector<8x32xf32>
    %351 = arith.addf %326, %350 : vector<8x32xf32>
    %352 = arith.index_cast %c1_i32 : i32 to index
    %c0_103 = arith.constant 0 : index
    %c0_104 = arith.constant 0 : index
    %353 = vector.load %arg8[%352, %c0_103, %c0_104] : memref<2x1x32xf32, #tpu.memory_space<vmem>>, vector<1x1x32xf32>
    %354 = vector.shape_cast %353 : vector<1x1x32xf32> to vector<1x32xf32>
    %355 = vector.broadcast %354 : vector<1x32xf32> to vector<8x32xf32>
    %356 = arith.addf %351, %355 : vector<8x32xf32>
    %357 = arith.addf %239, %356 : vector<8x32xf32>
    %358 = arith.index_cast %c1_i32 : i32 to index
    %c0_105 = arith.constant 0 : index
    %c0_106 = arith.constant 0 : index
    %359 = vector.load %arg9[%358, %c0_105, %c0_106] : memref<2x1x32xf32, #tpu.memory_space<vmem>>, vector<1x1x32xf32>
    %360 = vector.shape_cast %359 : vector<1x1x32xf32> to vector<1x32xf32>
    %361 = arith.index_cast %c1_i32 : i32 to index
    %c0_107 = arith.constant 0 : index
    %c0_108 = arith.constant 0 : index
    %362 = vector.load %arg10[%361, %c0_107, %c0_108] : memref<2x1x32xf32, #tpu.memory_space<vmem>>, vector<1x1x32xf32>
    %363 = vector.shape_cast %362 : vector<1x1x32xf32> to vector<1x32xf32>
    %cst_109 = arith.constant dense<0.000000e+00> : vector<8xf32>
    %364 = vector.multi_reduction <add>, %357, %cst_109 [1] : vector<8x32xf32> to vector<8xf32>
    %365 = vector.shape_cast %364 : vector<8xf32> to vector<8x1xf32>
    %cst_110 = arith.constant 3.200000e+01 : f32
    %366 = vector.broadcast %cst_110 : f32 to vector<8x1xf32>
    %367 = arith.divf %365, %366 : vector<8x1xf32>
    %368 = vector.broadcast %367 : vector<8x1xf32> to vector<8x32xf32>
    %369 = arith.subf %357, %368 : vector<8x32xf32>
    %370 = arith.mulf %369, %369 : vector<8x32xf32>
    %cst_111 = arith.constant dense<0.000000e+00> : vector<8xf32>
    %371 = vector.multi_reduction <add>, %370, %cst_111 [1] : vector<8x32xf32> to vector<8xf32>
    %372 = vector.shape_cast %371 : vector<8xf32> to vector<8x1xf32>
    %cst_112 = arith.constant 3.200000e+01 : f32
    %373 = vector.broadcast %cst_112 : f32 to vector<8x1xf32>
    %374 = arith.divf %372, %373 : vector<8x1xf32>
    %375 = vector.broadcast %367 : vector<8x1xf32> to vector<8x32xf32>
    %376 = arith.subf %357, %375 : vector<8x32xf32>
    %cst_113 = arith.constant 9.99999996E-13 : f32
    %377 = vector.broadcast %cst_113 : f32 to vector<8x1xf32>
    %378 = arith.addf %374, %377 : vector<8x1xf32>
    %379 = math.rsqrt %378 : vector<8x1xf32>
    %380 = vector.broadcast %379 : vector<8x1xf32> to vector<8x32xf32>
    %381 = arith.mulf %376, %380 : vector<8x32xf32>
    %382 = vector.broadcast %360 : vector<1x32xf32> to vector<8x32xf32>
    %383 = arith.mulf %381, %382 : vector<8x32xf32>
    %384 = vector.broadcast %363 : vector<1x32xf32> to vector<8x32xf32>
    %385 = arith.addf %383, %384 : vector<8x32xf32>
    %386 = arith.truncf %385 : vector<8x32xf32> to vector<8x32xbf16>
    %387 = arith.index_cast %c1_i32 : i32 to index
    %c0_114 = arith.constant 0 : index
    %c0_115 = arith.constant 0 : index
    %388 = vector.load %arg11[%387, %c0_114, %c0_115] : memref<2x32x64xbf16, #tpu.memory_space<vmem>>, vector<1x32x64xbf16>
    %389 = vector.shape_cast %388 : vector<1x32x64xbf16> to vector<32x64xbf16>
    %cst_116 = arith.constant dense<0.000000e+00> : vector<8x64xf32>
    %390 = tpu.matmul %386, %389, %cst_116 {dimension_numbers = #tpu.dot_dimension_numbers<[1], [0], [0], [1], [0, 0, 1, 1], [], []>} : vector<8x32xbf16>, vector<32x64xbf16>, vector<8x64xf32> -> vector<8x64xf32>
    %391 = arith.index_cast %c1_i32 : i32 to index
    %c0_117 = arith.constant 0 : index
    %c0_118 = arith.constant 0 : index
    %392 = vector.load %arg12[%391, %c0_117, %c0_118] : memref<2x1x64xf32, #tpu.memory_space<vmem>>, vector<1x1x64xf32>
    %393 = vector.shape_cast %392 : vector<1x1x64xf32> to vector<1x64xf32>
    %394 = vector.broadcast %393 : vector<1x64xf32> to vector<8x64xf32>
    %395 = arith.addf %390, %394 : vector<8x64xf32>
    %396 = arith.mulf %395, %395 : vector<8x64xf32>
    %397 = arith.mulf %395, %396 : vector<8x64xf32>
    %cst_119 = arith.constant 4.471500e-02 : f32
    %398 = vector.broadcast %cst_119 : f32 to vector<8x64xf32>
    %399 = arith.mulf %398, %397 : vector<8x64xf32>
    %400 = arith.addf %395, %399 : vector<8x64xf32>
    %cst_120 = arith.constant 0.797884583 : f32
    %401 = vector.broadcast %cst_120 : f32 to vector<8x64xf32>
    %402 = arith.mulf %401, %400 : vector<8x64xf32>
    %403 = math.tanh %402 : vector<8x64xf32>
    %cst_121 = arith.constant 1.000000e+00 : f32
    %404 = vector.broadcast %cst_121 : f32 to vector<8x64xf32>
    %405 = arith.addf %404, %403 : vector<8x64xf32>
    %cst_122 = arith.constant 5.000000e-01 : f32
    %406 = vector.broadcast %cst_122 : f32 to vector<8x64xf32>
    %407 = arith.mulf %406, %405 : vector<8x64xf32>
    %408 = arith.mulf %395, %407 : vector<8x64xf32>
    %409 = arith.truncf %408 : vector<8x64xf32> to vector<8x64xbf16>
    %410 = arith.index_cast %c1_i32 : i32 to index
    %c0_123 = arith.constant 0 : index
    %c0_124 = arith.constant 0 : index
    %411 = vector.load %arg13[%410, %c0_123, %c0_124] : memref<2x64x32xbf16, #tpu.memory_space<vmem>>, vector<1x64x32xbf16>
    %412 = vector.shape_cast %411 : vector<1x64x32xbf16> to vector<64x32xbf16>
    %cst_125 = arith.constant dense<0.000000e+00> : vector<8x32xf32>
    %413 = tpu.matmul %409, %412, %cst_125 {dimension_numbers = #tpu.dot_dimension_numbers<[1], [0], [0], [1], [0, 0, 1, 1], [], []>} : vector<8x64xbf16>, vector<64x32xbf16>, vector<8x32xf32> -> vector<8x32xf32>
    %414 = arith.index_cast %c1_i32 : i32 to index
    %c0_126 = arith.constant 0 : index
    %c0_127 = arith.constant 0 : index
    %415 = vector.load %arg14[%414, %c0_126, %c0_127] : memref<2x1x32xf32, #tpu.memory_space<vmem>>, vector<1x1x32xf32>
    %416 = vector.shape_cast %415 : vector<1x1x32xf32> to vector<1x32xf32>
    %417 = vector.broadcast %416 : vector<1x32xf32> to vector<8x32xf32>
    %418 = arith.addf %413, %417 : vector<8x32xf32>
    %419 = arith.addf %385, %418 : vector<8x32xf32>
    %420 = arith.index_cast %c1_i32 : i32 to index
    %c0_128 = arith.constant 0 : index
    %c0_129 = arith.constant 0 : index
    %421 = vector.load %arg15[%420, %c0_128, %c0_129] : memref<2x1x32xf32, #tpu.memory_space<vmem>>, vector<1x1x32xf32>
    %422 = vector.shape_cast %421 : vector<1x1x32xf32> to vector<1x32xf32>
    %423 = arith.index_cast %c1_i32 : i32 to index
    %c0_130 = arith.constant 0 : index
    %c0_131 = arith.constant 0 : index
    %424 = vector.load %arg16[%423, %c0_130, %c0_131] : memref<2x1x32xf32, #tpu.memory_space<vmem>>, vector<1x1x32xf32>
    %425 = vector.shape_cast %424 : vector<1x1x32xf32> to vector<1x32xf32>
    %cst_132 = arith.constant dense<0.000000e+00> : vector<8xf32>
    %426 = vector.multi_reduction <add>, %419, %cst_132 [1] : vector<8x32xf32> to vector<8xf32>
    %427 = vector.shape_cast %426 : vector<8xf32> to vector<8x1xf32>
    %cst_133 = arith.constant 3.200000e+01 : f32
    %428 = vector.broadcast %cst_133 : f32 to vector<8x1xf32>
    %429 = arith.divf %427, %428 : vector<8x1xf32>
    %430 = vector.broadcast %429 : vector<8x1xf32> to vector<8x32xf32>
    %431 = arith.subf %419, %430 : vector<8x32xf32>
    %432 = arith.mulf %431, %431 : vector<8x32xf32>
    %cst_134 = arith.constant dense<0.000000e+00> : vector<8xf32>
    %433 = vector.multi_reduction <add>, %432, %cst_134 [1] : vector<8x32xf32> to vector<8xf32>
    %434 = vector.shape_cast %433 : vector<8xf32> to vector<8x1xf32>
    %cst_135 = arith.constant 3.200000e+01 : f32
    %435 = vector.broadcast %cst_135 : f32 to vector<8x1xf32>
    %436 = arith.divf %434, %435 : vector<8x1xf32>
    %437 = vector.broadcast %429 : vector<8x1xf32> to vector<8x32xf32>
    %438 = arith.subf %419, %437 : vector<8x32xf32>
    %cst_136 = arith.constant 9.99999996E-13 : f32
    %439 = vector.broadcast %cst_136 : f32 to vector<8x1xf32>
    %440 = arith.addf %436, %439 : vector<8x1xf32>
    %441 = math.rsqrt %440 : vector<8x1xf32>
    %442 = vector.broadcast %441 : vector<8x1xf32> to vector<8x32xf32>
    %443 = arith.mulf %438, %442 : vector<8x32xf32>
    %444 = vector.broadcast %422 : vector<1x32xf32> to vector<8x32xf32>
    %445 = arith.mulf %443, %444 : vector<8x32xf32>
    %446 = vector.broadcast %425 : vector<1x32xf32> to vector<8x32xf32>
    %447 = arith.addf %445, %446 : vector<8x32xf32>
    %c2_i32 = arith.constant 2 : i32
    %c0_137 = arith.constant 0 : index
    %c0_138 = arith.constant 0 : index
    %448 = vector.load %arg19[%c0_137, %c0_138] : memref<8x32xf32, #tpu.memory_space<vmem>>, vector<8x32xf32>
    tpu.vector_store %arg19[%c0_137, %c0_138], %447 {strides = array<i32>} : memref<8x32xf32, #tpu.memory_space<vmem>>, vector<8x32xf32>,
    %449 = vector.extract_strided_slice %447 {offsets = [0, 0], sizes = [1, 32], strides = [1, 1]} : vector<8x32xf32> to vector<1x32xf32>
    %450 = arith.truncf %449 : vector<1x32xf32> to vector<1x32xbf16>
    %c0_139 = arith.constant 0 : index
    %c0_140 = arith.constant 0 : index
    %451 = vector.load %arg17[%c0_139, %c0_140] : memref<32x32xbf16, #tpu.memory_space<vmem>>, vector<32x32xbf16>
    %cst_141 = arith.constant dense<0.000000e+00> : vector<1x32xf32>
    %452 = tpu.matmul %450, %451, %cst_141 {dimension_numbers = #tpu.dot_dimension_numbers<[1], [0], [0], [1], [0, 0, 1, 1], [], []>} : vector<1x32xbf16>, vector<32x32xbf16>, vector<1x32xf32> -> vector<1x32xf32>
    %c0_142 = arith.constant 0 : index
    %c0_143 = arith.constant 0 : index
    %453 = vector.load %arg18[%c0_142, %c0_143] : memref<1x32xf32, #tpu.memory_space<vmem>>, vector<1x32xf32>
    %454 = arith.addf %452, %453 : vector<1x32xf32>
    %455 = math.tanh %454 : vector<1x32xf32>
    %c0_144 = arith.constant 0 : index
    %c0_145 = arith.constant 0 : index
    %c0_146 = arith.constant 0 : index
    %456 = vector.load %arg20[%c0_144, %c0_145, %c0_146] : memref<1x1x32xf32, #tpu.memory_space<vmem>>, vector<1x1x32xf32>
    %457 = vector.shape_cast %456 : vector<1x1x32xf32> to vector<1x32xf32>
    %458 = vector.shape_cast %455 : vector<1x32xf32> to vector<1x1x32xf32>
    tpu.vector_store %arg20[%c0_144, %c0_145, %c0_146], %458 {strides = array<i32>} : memref<1x1x32xf32, #tpu.memory_space<vmem>>, vector<1x1x32xf32>,
    return
  }
  func.func @transform_0(%arg0: i32) -> (i32, i32, i32) {
    %c0_i32 = arith.constant 0 : i32
    %c0_i32_0 = arith.constant 0 : i32
    %c0_i32_1 = arith.constant 0 : i32
    return %arg0, %c0_i32, %c0_i32_0 : i32, i32, i32
  }
  func.func @transform_1(%arg0: i32) -> (i32, i32) {
    %c0_i32 = arith.constant 0 : i32
    %c0_i32_0 = arith.constant 0 : i32
    return %arg0, %c0_i32 : i32, i32
  }
  func.func @transform_2(%arg0: i32) -> (i32, i32) {
    %c0_i32 = arith.constant 0 : i32
    %c0_i32_0 = arith.constant 0 : i32
    %c0_i32_1 = arith.constant 0 : i32
    return %c0_i32, %c0_i32_0 : i32, i32
  }
  func.func @transform_3(%arg0: i32) -> (i32, i32) {
    %c0_i32 = arith.constant 0 : i32
    %c0_i32_0 = arith.constant 0 : i32
    %c0_i32_1 = arith.constant 0 : i32
    return %c0_i32, %c0_i32_0 : i32, i32
  }
  func.func @transform_4(%arg0: i32) -> (i32, i32, i32) {
    %c0_i32 = arith.constant 0 : i32
    %c0_i32_0 = arith.constant 0 : i32
    %c0_i32_1 = arith.constant 0 : i32
    %c0_i32_2 = arith.constant 0 : i32
    return %c0_i32, %c0_i32_0, %c0_i32_1 : i32, i32, i32
  }
  func.func @transform_5(%arg0: i32) -> (i32, i32, i32) {
    %c0_i32 = arith.constant 0 : i32
    %c0_i32_0 = arith.constant 0 : i32
    %c0_i32_1 = arith.constant 0 : i32
    %c0_i32_2 = arith.constant 0 : i32
    return %c0_i32, %c0_i32_0, %c0_i32_1 : i32, i32, i32
  }
  func.func @transform_6(%arg0: i32) -> (i32, i32, i32) {
    %c0_i32 = arith.constant 0 : i32
    %c0_i32_0 = arith.constant 0 : i32
    %c0_i32_1 = arith.constant 0 : i32
    %c0_i32_2 = arith.constant 0 : i32
    return %c0_i32, %c0_i32_0, %c0_i32_1 : i32, i32, i32
  }
  func.func @transform_7(%arg0: i32) -> (i32, i32, i32) {
    %c0_i32 = arith.constant 0 : i32
    %c0_i32_0 = arith.constant 0 : i32
    %c0_i32_1 = arith.constant 0 : i32
    %c0_i32_2 = arith.constant 0 : i32
    return %c0_i32, %c0_i32_0, %c0_i32_1 : i32, i32, i32
  }
  func.func @transform_8(%arg0: i32) -> (i32, i32, i32) {
    %c0_i32 = arith.constant 0 : i32
    %c0_i32_0 = arith.constant 0 : i32
    %c0_i32_1 = arith.constant 0 : i32
    %c0_i32_2 = arith.constant 0 : i32
    return %c0_i32, %c0_i32_0, %c0_i32_1 : i32, i32, i32
  }
  func.func @transform_9(%arg0: i32) -> (i32, i32, i32) {
    %c0_i32 = arith.constant 0 : i32
    %c0_i32_0 = arith.constant 0 : i32
    %c0_i32_1 = arith.constant 0 : i32
    %c0_i32_2 = arith.constant 0 : i32
    return %c0_i32, %c0_i32_0, %c0_i32_1 : i32, i32, i32
  }
  func.func @transform_10(%arg0: i32) -> (i32, i32, i32) {
    %c0_i32 = arith.constant 0 : i32
    %c0_i32_0 = arith.constant 0 : i32
    %c0_i32_1 = arith.constant 0 : i32
    %c0_i32_2 = arith.constant 0 : i32
    return %c0_i32, %c0_i32_0, %c0_i32_1 : i32, i32, i32
  }
  func.func @transform_11(%arg0: i32) -> (i32, i32, i32) {
    %c0_i32 = arith.constant 0 : i32
    %c0_i32_0 = arith.constant 0 : i32
    %c0_i32_1 = arith.constant 0 : i32
    %c0_i32_2 = arith.constant 0 : i32
    return %c0_i32, %c0_i32_0, %c0_i32_1 : i32, i32, i32
  }
  func.func @transform_12(%arg0: i32) -> (i32, i32, i32) {
    %c0_i32 = arith.constant 0 : i32
    %c0_i32_0 = arith.constant 0 : i32
    %c0_i32_1 = arith.constant 0 : i32
    %c0_i32_2 = arith.constant 0 : i32
    return %c0_i32, %c0_i32_0, %c0_i32_1 : i32, i32, i32
  }
  func.func @transform_13(%arg0: i32) -> (i32, i32, i32) {
    %c0_i32 = arith.constant 0 : i32
    %c0_i32_0 = arith.constant 0 : i32
    %c0_i32_1 = arith.constant 0 : i32
    %c0_i32_2 = arith.constant 0 : i32
    return %c0_i32, %c0_i32_0, %c0_i32_1 : i32, i32, i32
  }
  func.func @transform_14(%arg0: i32) -> (i32, i32, i32) {
    %c0_i32 = arith.constant 0 : i32
    %c0_i32_0 = arith.constant 0 : i32
    %c0_i32_1 = arith.constant 0 : i32
    %c0_i32_2 = arith.constant 0 : i32
    return %c0_i32, %c0_i32_0, %c0_i32_1 : i32, i32, i32
  }
  func.func @transform_15(%arg0: i32) -> (i32, i32, i32) {
    %c0_i32 = arith.constant 0 : i32
    %c0_i32_0 = arith.constant 0 : i32
    %c0_i32_1 = arith.constant 0 : i32
    %c0_i32_2 = arith.constant 0 : i32
    return %c0_i32, %c0_i32_0, %c0_i32_1 : i32, i32, i32
  }
  func.func @transform_16(%arg0: i32) -> (i32, i32) {
    %c0_i32 = arith.constant 0 : i32
    %c0_i32_0 = arith.constant 0 : i32
    %c0_i32_1 = arith.constant 0 : i32
    return %c0_i32, %c0_i32_0 : i32, i32
  }
  func.func @transform_17(%arg0: i32) -> (i32, i32) {
    %c0_i32 = arith.constant 0 : i32
    %c0_i32_0 = arith.constant 0 : i32
    %c0_i32_1 = arith.constant 0 : i32
    return %c0_i32, %c0_i32_0 : i32, i32
  }
  func.func @transform_18(%arg0: i32) -> (i32, i32) {
    %c0_i32 = arith.constant 0 : i32
    %c0_i32_0 = arith.constant 0 : i32
    return %arg0, %c0_i32 : i32, i32
  }
  func.func @transform_19(%arg0: i32) -> (i32, i32, i32) {
    %c0_i32 = arith.constant 0 : i32
    %c0_i32_0 = arith.constant 0 : i32
    %c0_i32_1 = arith.constant 0 : i32
    return %arg0, %c0_i32, %c0_i32_0 : i32, i32, i32
  }
}

</mosaic_0001>

<bundles_post_ra>
// kernel: bert_pallas_forward.1
= control target key start
LH: loop header
LB: loop body
LE: loop exit
PB: predicated region body
PF: predicated region fallthrough
CT: control target
= control target key end

     0   :  { %s3983_s0 = inlined_call_operand.vmem [shape: f32[2,1,8], index: 0, kind: input, shape index: {}]   ;;  %s3984_s1 = inlined_call_operand.vmem [shape: f32[16,32], index: 1, kind: input, shape index: {}]   ;;  %s3985_s2 = inlined_call_operand.vmem [shape: f32[1,32], index: 2, kind: input, shape index: {}]   ;;  %s3986_s3 = inlined_call_operand.vmem [shape: f32[1,32], index: 3, kind: input, shape index: {}]   ;;  %s3987_s4 = inlined_call_operand.vmem [shape: bf16[2,32,96], index: 4, kind: input, shape index: {}]   ;;  %s3988_s5 = inlined_call_operand.vmem [shape: f32[2,1,96], index: 5, kind: input, shape index: {}]   ;;  %s3989_s6 = inlined_call_operand.vmem [shape: bf16[2,32,32], index: 6, kind: input, shape index: {}]   ;;  %s3990_s7 = inlined_call_operand.vmem [shape: f32[2,1,32], index: 7, kind: input, shape index: {}]   ;;  %s3991_s8 = inlined_call_operand.vmem [shape: f32[2,1,32], index: 8, kind: input, shape index: {}]   ;;  %s3992_s9 = inlined_call_operand.vmem [shape: f32[2,1,32], index: 9, kind: input, shape index: {}]   ;;  %s3993_s10 = inlined_call_operand.vmem [shape: bf16[2,32,64], index: 10, kind: input, shape index: {}]   ;;  %s3994_s11 = inlined_call_operand.vmem [shape: f32[2,1,64], index: 11, kind: input, shape index: {}]   ;;  %s3995_s12 = inlined_call_operand.vmem [shape: bf16[2,64,32], index: 12, kind: input, shape index: {}]   ;;  %s3996_s13 = inlined_call_operand.vmem [shape: f32[2,1,32], index: 13, kind: input, shape index: {}]   ;;  %s3997_s14 = inlined_call_operand.vmem [shape: f32[2,1,32], index: 14, kind: input, shape index: {}]   ;;  %s3998_s15 = inlined_call_operand.vmem [shape: f32[2,1,32], index: 15, kind: input, shape index: {}]   ;;  %s3999_s16 = inlined_call_operand.vmem [shape: bf16[32,32], index: 16, kind: input, shape index: {}]   ;;  %s4000_s17 = inlined_call_operand.vmem [shape: f32[1,32], index: 17, kind: input, shape index: {}]   ;;  %s4001_s18 = inlined_call_operand.hbm [shape: f32[16,32], index: 18, kind: output, shape index: {0}]   ;;  %s4002_s19 = inlined_call_operand.hbm [shape: f32[2,1,32], index: 19, kind: output, shape index: {1}]  }
   0x1   :  { %4015 = sst [smem:[#allocation11_spill]] %s3983_s0 }
   0x2   :  { %4016 = sst [smem:[#allocation12_spill]] %s3984_s1 }
   0x3   :  { %4017 = sst [smem:[#allocation13_spill]] %s3985_s2 }
   0x4   :  { %4018 = sst [smem:[#allocation14_spill]] %s3986_s3 }
   0x5   :  { %4019 = sst [smem:[#allocation15_spill]] %s3987_s4 }
   0x6   :  { %4020 = sst [smem:[#allocation16_spill]] %s3988_s5 }
   0x7   :  { %4021 = sst [smem:[#allocation17_spill]] %s3989_s6 }
   0x8   :  { %25 = vsyncpa [#allocation3], 0 }
   0x9   :  { %27 = vsyncpa [#allocation3 + $0x1], 0 }
   0xa   :  { %28 = vsyncpa [#allocation5], 0 }
   0xb   :  { %30 = vsyncpa [#allocation5 + $0x1], 0  ;;  %s3450_s0 = smov 0   ;;  %s3452_s30 = smov 0  }
   0xc   :  { %s3454_s20 = smov 0   ;;  %s3456_s21 = smov 0  }
   0xd LB: > { %4022 = sst [smem:[#allocation8_spill]] %s3328_s20  ;;  %s3471_s1 = sadd.s32 4294967295, %s3332_s21   ;;  %s3332_s21 = sphi %s3456_s21, %s4043_s21   ;;  %s3328_s20 = sphi %s3454_s20, %s4045_s20   ;;  %s3324_s30 = sphi %s3452_s30, %s4047_s30   ;;  %s3320_s0 = sphi %s3450_s0, %s4046_s0  }
   0xe   : > { %s2727_s22 = sadd.s32 4294967294, %s3332_s21   ;;  %s3475_s2 = sadd.s32 1, %s3332_s21  }
   0xf   : > { %4023 = sst [smem:[#allocation9_spill]] %s3475_s2  ;;  %s431_s23 = sadd.s32 1, %s3328_s20 }
  0x10   : > { %s428_s24 = ssub.s32 %s3332_s21, %s3475_s2  ;;  %p441_p0 = scmp.ne.s32.totalorder %s3328_s20, %s3324_s30 }
  0x11   : > { %p429_p1 = scmp.eq.s32.totalorder %s428_s24, 0  ;;  %p442_p2 = scmp.eq.s32.totalorder %s3471_s1, 1 }
  0x12   : > { %p447_p3 = scmp.ne.s32.totalorder %s3324_s30, %s3320_s0  ;;  %p448_p4 = scmp.eq.s32.totalorder %s2727_s22, 1 }
  0x13   : > { %s3486_s25 = scalar_select %p429_p1, %s3328_s20, %s431_s23  }
  0x14   : > { %p3488_p5 = por %p442_p2, %p441_p0  ;;  %p3492_p6 = por %p448_p4, %p447_p3 }
  0x15   : > { %4024 = sst [smem:[#allocation10_spill]] %s3486_s25  ;;  %p2730_p7 = scmp.ge.s32.totalorder %s3332_s21, 1 }
  0x16   : > { %p553_p8 = scmp.lt.s32.totalorder %s3332_s21, 3 }
  0x18   : > { %p554_p9 = pnand %p2730_p7, %p553_p8 }
  0x19   : > { %p615_p10 = scmp.lt.s32.totalorder (!%p554_p9), %s3471_s1, 1  ;;  %vm629_vm0 = vcmask (!%p554_p9), 261120   ;;  %s4027_s23 = sld [smem:[#allocation12_spill]] (!%p554_p9)  ;;  %v3334_v8 = vmov (!%p554_p9), 0.0   ;;  %vm3335_vm1 = vmmov (!%p554_p9), 0   ;;  %vm739_vm2 = vcmask (!%p554_p9), 64512  }
  0x1a   : > { %557 = sbr.rel (%p554_p9) target bundleno = 7970 (0x1f22), region = 92  ;;  %s4028_s4 = sld [smem:[#allocation15_spill]] (!%p554_p9)  ;;  %2906 = vmatprep.subr.bf16.mxu0 (!%p554_p9), %v3334_v8  ;;  %2914 = vmatprep.subr.bf16.mxu1 (!%p554_p9), %v3334_v8  ;;  %v731_v32 = vlaneseq (!%p554_p9)  ;;  %v3339_v36 = vmov (!%p554_p9), -1e+09   ;;  %vm803_vm4 = vcmask (!%p554_p9), 1043456   ;;  %vm1521_vm5 = vcmask (!%p554_p9), 523264  }
  0x1b   : > { %2910 = vmatprep.mubr.msk.bf16.mxu0 (!%p554_p9), %vm3335_vm1, %v3334_v8  ;;  %2916 = vmatprep.mubr.msk.bf16.mxu1 (!%p554_p9), %vm3335_vm1, %v3334_v8  ;;  %s4029_s22 = sld [smem:[#allocation13_spill]] (!%p554_p9)  ;;  %s4031_s5 = sld [smem:[#allocation16_spill]] (!%p554_p9) }
  0x1c   : > { %s4014_s20 = smov (!%p554_p9), 120   ;;  %s3337_s25 = smov (!%p554_p9), 96   ;;  %v732_v34 = vshrl.u32 (!%p554_p9), %v731_v32, 7 }
  0x1d   : > { %s4007_s29 = smov (!%p554_p9), 64   ;;  %s4012_s2 = smov (!%p554_p9), 80  }
  0x1e   : > { %v733_v35 = vsub.s32 (!%p554_p9), 0, %v732_v34  ;;  %s4033_s6 = sld [smem:[#allocation17_spill]] (!%p554_p9) }
  0x20   : > { %v3172_v7 = vld [vmem:[%s4028_s4] sm:$0xff] (!%p554_p9)   ;;  %v3173_v9 = vld [vmem:[%s4028_s4 + $0x8] sm:$0xff] (!%p554_p9)  }
  0x21   : > { %s3500_s27 = scalar_select %p615_p10, %s3471_s1, 1  ;;  %2907 = vmatpush3.bf16.msra.mxu0 %v3172_v7  ;;  %v2733_v14 = vld [vmem:[%s4029_s22] ss:$0 sm:$0xff] }
  0x22   : > { %2908 = vmatprep.subr.bf16.mxu0 %v3334_v8  ;;  %v2735_v20 = vld [vmem:[%s4031_s5] ss:$0 sm:$0xff]  ;;  %s3338_s22 = smov 88  }
  0x23   : > { %s2732_s28 = sshll.u32 %s3500_s27, 3 }
  0x24   : > { %s621_s24 = scalar_lea.vmem %s4027_s23, %s2732_s28  ;;  %s4030_s28 = sld [smem:[#allocation14_spill]] }
  0x25   : > { %v626_v0 = vld [vmem:[%s621_s24] sm:$0xff]  ;;  %2909 = vmatpush3.bf16.msra.mxu0 %v3173_v9  ;;  %s4032_s24 = sld [smem:[#allocation11_spill]]  ;;  %s4006_s23 = smov 112  }
  0x26   : > { %v630_v1 = vsel %vm629_vm0, %v626_v0, 0.0  ;;  %2920 = vmatprep.subr.bf16.mxu0 %v3334_v8 }
  0x27   : > { %631 = vadd.xlane.f32.xlu0 %v630_v1 }
  0x2a   : > { %v2734_v16 = vld [vmem:[%s4030_s28] ss:$0 sm:$0xff] }
  0x2b   : > { %s617_s28 = scalar_lea.vmem %s4032_s24, %s3500_s27  ;;  %s4013_s27 = smov 56  }
  0x2c   : > { %v623_v33 = vld [vmem:[%s617_s28] sm:$0x1]  ;;  %s4011_s24 = smov 72   ;;  %s4034_s28 = smov 120  }
  0x2d   : > { %vm624_vm3 = vcmp.gt.f32.partialorder %v623_v33, 0.5 }
  0x2e   : > { %v625_v37 = vsel %vm624_vm3, 0.0, %v3339_v36 }
  0x2f   : > { %v3561_v38 = vrot.slane %v625_v37, %v733_v35 }
  0xb4   : > { %v632_v2 = vpop.xlane.xlu0 %631 }
  0xb5   : > { %v634_v3 = vmul.f32 0.03125, %v632_v2 }
  0xb7   : > { %v635_v4 = vsub.f32 %v626_v0, %v634_v3 }
  0xb9   : > { %v636_v5 = vmul.f32 %v635_v4, %v635_v4 }
  0xbb   : > { %v637_v6 = vsel %vm629_vm0, %v636_v5, 0.0 }
  0xbc   : > { %638 = vadd.xlane.f32.xlu0 %v637_v6 }
 0x149   : > { %v639_v10 = vpop.xlane.xlu0 %638 }
 0x14a   : > { %v640_v11 = vmul.f32 0.03125, %v639_v10  ;;  %v725_v10 = vld [vmem:[%s4033_s6] sm:$0xf] }
 0x14c   : > { %v641_v12 = vadd.f32 1e-12, %v640_v11  ;;  %v1009_v11 = vsel %vm803_vm4, %v725_v10, 0 }
 0x14e   : > { %3190 = vrsqrt.f32 %v641_v12  ;;  %v726_v12 = vld [vmem:[%s4033_s6 + $0x4] sm:$0xf] }
 0x158   : > { %v3191_v13 = vpop.eup %3190 }
 0x159   : > { %v643_v15 = vmul.f32 %v3191_v13, %v635_v4  ;;  %v963_v13 = vsel %vm803_vm4, %v726_v12, 0 }
 0x15b   : > { %v650_v17 = vmul.f32 %v2733_v14, %v643_v15 }
 0x15d   : > { %v3528_v18 = vadd.f32 %v2734_v16, %v650_v17 }
 0x15f   : > { %v658_v19 = vpack.c.bf16 %v3528_v18, %v3528_v18 }
 0x161   : > { %2911 = vmatmul.mubr.msk.bf16.vlgmr.msra.gmra.mrb[0].mxu0 %vm629_vm0, %v658_v19 }
 0x162   : > { %2922 = vmatprep.mubr.msk.bf16.mxu0 %vm3335_vm1, %v3334_v8 }
 0x234   : > { %v719_v21 = vpop.f32.mrb[0].mxu0 }
 0x235   : > { %v720_v22 = vadd.f32 %v2735_v20, %v719_v21  ;;  %v2912_v23 = vpop.f32.mrb[1].mxu0 }
 0x236   : > { %v722_v24 = vpop.f32.mrb[2].mxu0 }
 0x237   : > { %v3538_v25 = vpack.c.bf16 %v720_v22, %v720_v22  ;;  %v2913_v26 = vpop.f32.mrb[3].mxu0 }
 0x239   : > { %848 = vrot.lane.b32.xlu0 %v3538_v25, %s4014_s20  ;;  %737 = vrot.lane.b32.xlu1 %v3538_v25, %s3337_s25  ;;  %s4038_s20 = smov 112  }
 0x23d   : > { %850 = vrot.lane.b32.xlu1 %v3538_v25, %s3338_s22 }
 0x2ab   : > { %v738_v27 = vpop.permute.xlu1 %737  ;;  %v849_v31 = vpop.permute.xlu0 %848 }
 0x2ac   : > { %v744_v28 = vsel %vm739_vm2, %v738_v27, 0 }
 0x2ad   : > { %2915 = vmatpush3.bf16.xpose.msra.mxu1 %v744_v28 }
 0x2ae   : > { %2926 = vmatprep.subr.bf16.mxu1 %v3334_v8 }
 0x2af   : > { %v851_v29 = vpop.permute.xlu1 %850 }
 0x2b0   : > { %v856_v30 = vsel %vm739_vm2, %v851_v29, 0 }
 0x2b4   : > { %2917 = vmatmul.mubr.msk.bf16.vlgmr.msra.gmra.mrb[0].mxu1 %vm739_vm2, %v3538_v25 }
 0x2b5   : > { %2927 = vmatpush3.bf16.xpose.msra.mxu1 %v856_v30  ;;  %2928 = vmatprep.mubr.msk.bf16.mxu1 %vm3335_vm1, %v3334_v8 }
 0x2b6   : > { %2938 = vmatprep.subr.bf16.mxu1 %v3334_v8 }
 0x2bc   : > { %2929 = vmatmul.mubr.msk.bf16.vlgmr.msra.gmra.mrb[4].mxu1 %vm739_vm2, %v849_v31 }
 0x2bd   : > { %2940 = vmatprep.mubr.msk.bf16.mxu1 %vm3335_vm1, %v3334_v8  ;;  %2939 = vmatpush3.bf16.msra.mxu1 %v963_v13 }
 0x2be   : > { %2950 = vmatprep.subr.bf16.mxu1 %v3334_v8 }
 0x387   : > { %v780_v39 = vpop.f32.mrb[0].mxu1 }
 0x388   : > { %v781_v40 = vadd.f32 %v780_v39, %v3561_v38  ;;  %v2918_v41 = vpop.f32.mrb[1].mxu1 }
 0x389   : > { %v783_v42 = vpop.f32.mrb[2].mxu1 }
 0x38a   : > { %v2919_v43 = vpop.f32.mrb[3].mxu1  ;;  %v786_v44 = vsel %vm739_vm2, %v781_v40, -inf }
 0x38b   : > { %787 = vmax.xlane.f32.xlu1 %v786_v44 }
 0x38f   : > { %v892_v45 = vpop.f32.mrb[4].mxu1 }
 0x390   : > { %v893_v46 = vadd.f32 %v892_v45, %v3561_v38  ;;  %v2930_v47 = vpop.f32.mrb[5].mxu1 }
 0x391   : > { %v895_v48 = vpop.f32.mrb[6].mxu1 }
 0x392   : > { %v2931_v49 = vpop.f32.mrb[7].mxu1  ;;  %v898_v50 = vsel %vm739_vm2, %v893_v46, -inf }
 0x393   : > { %899 = vmax.xlane.f32.xlu0 %v898_v50 }
 0x3a9   : > { %910 = vrot.lane.b32.xlu0 %v3538_v25, %s4013_s27  ;;  %s4037_s27 = smov 64  }
 0x418   : > { %v788_v51 = vpop.xlane.xlu1 %787 }
 0x419   : > { %v789_v52 = vsub.f32 %v781_v40, %v788_v51 }
 0x41b   : > { %v790_v53 = vmul.f32 1.442695, %v789_v52 }
 0x41d   : > { %3192 = vpow2.f32 %v790_v53 }
 0x420   : > { %v900_v54 = vpop.xlane.xlu0 %899 }
 0x421   : > { %v901_v55 = vsub.f32 %v893_v46, %v900_v54 }
 0x423   : > { %v902_v56 = vmul.f32 1.442695, %v901_v55 }
 0x424   : > { %v911_v3 = vpop.permute.xlu0 %910 }
 0x425   : > { %3194 = vpow2.f32 %v902_v56  ;;  %v916_v5 = vsel %vm803_vm4, %v911_v3, 0 }
 0x427   : > { %v3193_v57 = vpop.eup %3192 }
 0x428   : > { %v792_v58 = vsel %vm739_vm2, %v3193_v57, 0.0 }
 0x429   : > { %793 = vadd.xlane.f32.xlu1 %v792_v58 }
 0x42f   : > { %v3195_v59 = vpop.eup %3194 }
 0x430   : > { %v904_v60 = vsel %vm739_vm2, %v3195_v59, 0.0 }
 0x431   : > { %905 = vadd.xlane.f32.xlu1 %v904_v60 }
 0x442   : > { %798 = vrot.lane.b32.xlu1 %v3538_v25, %s4007_s29  ;;  %s4008_s29 = smov 48  }
 0x446   : > { %1053 = vrot.lane.b32.xlu1 %v3538_v25, %s4012_s2  ;;  %s4042_s2 = smov 40  }
 0x44a   : > { %1051 = vrot.lane.b32.xlu1 %v3538_v25, %s4006_s23  ;;  %s4010_s23 = smov 104  }
 0x4b6   : > { %v794_v61 = vpop.xlane.xlu1 %793 }
 0x4b7   : > { %3196 = vrcp.f32 %v794_v61 }
 0x4be   : > { %v906_v62 = vpop.xlane.xlu1 %905 }
 0x4bf   : > { %3198 = vrcp.f32 %v906_v62 }
 0x4c1   : > { %v3197_v63 = vpop.eup %3196 }
 0x4c2   : > { %v796_v0 = vmul.f32 %v3197_v63, %v3193_v57  ;;  %v799_v1 = vpop.permute.xlu1 %798 }
 0x4c3   : > { %v805_v2 = vsel %vm803_vm4, %v799_v1, 0 }
 0x4c4   : > { %2921 = vmatpush3.bf16.msra.mxu0 %v805_v2  ;;  %v797_v4 = vpack.c.bf16 %v796_v0, %v796_v0 }
 0x4c5   : > { %2932 = vmatprep.subr.bf16.mxu0 %v3334_v8 }
 0x4c6   : > { %v1054_v20 = vpop.permute.xlu1 %1053 }
 0x4c7   : > { %2923 = vmatmul.mubr.msk.bf16.vlgmr.msra.gmra.mrb[4].mxu0 %vm739_vm2, %v797_v4  ;;  %v1059_v26 = vsel %vm739_vm2, %v1054_v20, 0 }
 0x4c8   : > { %2933 = vmatpush3.bf16.msra.mxu0 %v916_v5  ;;  %2934 = vmatprep.mubr.msk.bf16.mxu0 %vm3335_vm1, %v3334_v8 }
 0x4c9   : > { %v3199_v6 = vpop.eup %3198  ;;  %2944 = vmatprep.subr.bf16.mxu0 %v3334_v8 }
 0x4ca   : > { %v908_v7 = vmul.f32 %v3199_v6, %v3195_v59  ;;  %v1052_v28 = vpop.permute.xlu1 %1051  ;;  %v727_v59 = vld [vmem:[%s4033_s6 + $0x8] sm:$0xf] }
 0x4cb   : > { %v1166_v60 = vsel %vm803_vm4, %v727_v59, 0  ;;  %v3176_v59 = vld [vmem:[%s3995_s12] sm:$0xff]  }
 0x4cc   : > { %v909_v9 = vpack.c.bf16 %v908_v7, %v908_v7 }
 0x4cf   : > { %2935 = vmatmul.mubr.msk.bf16.vlgmr.msra.gmra.mrb[8].mxu0 %vm739_vm2, %v909_v9 }
 0x4d0   : > { %2946 = vmatprep.mubr.msk.bf16.mxu0 %vm3335_vm1, %v3334_v8  ;;  %2945 = vmatpush3.bf16.msra.mxu0 %v1009_v11 }
 0x4d1   : > { %2956 = vmatprep.subr.bf16.mxu0 %v3334_v8 }
 0x59a   : > { %v841_v14 = vpop.f32.mrb[4].mxu0 }
 0x59b   : > { %v847_v15 = vpack.c.bf16 %v841_v14, %v841_v14  ;;  %v2924_v16 = vpop.f32.mrb[5].mxu0 }
 0x59c   : > { %v844_v17 = vpop.f32.mrb[6].mxu0 }
 0x59d   : > { %v2925_v19 = vpop.f32.mrb[7].mxu0  ;;  %2947 = vmatmul.mubr.msk.bf16.vlgmr.msra.gmra.mrb[12].mxu0 %vm739_vm2, %v847_v15 }
 0x59e   : > { %2958 = vmatprep.mubr.msk.bf16.mxu0 %vm3335_vm1, %v3334_v8 }
 0x5a2   : > { %v952_v21 = vpop.f32.mrb[8].mxu0 }
 0x5a3   : > { %v958_v22 = vpack.c.bf16 %v952_v21, %v952_v21  ;;  %v2936_v23 = vpop.f32.mrb[9].mxu0 }
 0x5a4   : > { %v955_v24 = vpop.f32.mrb[10].mxu0 }
 0x5a5   : > { %v2937_v27 = vpop.f32.mrb[11].mxu0  ;;  %2941 = vmatmul.mubr.msk.bf16.vlgmr.msra.gmra.mrb[8].mxu1 %vm739_vm2, %v958_v22 }
 0x5a6   : > { %2951 = vmatpush3.bf16.xpose.msra.mxu1 %v1059_v26  ;;  %2952 = vmatprep.mubr.msk.bf16.mxu1 %vm3335_vm1, %v3334_v8 }
 0x5a7   : > { %2962 = vmatprep.subr.bf16.mxu1 %v3334_v8 }
 0x5ad   : > { %2953 = vmatmul.mubr.msk.bf16.vlgmr.msra.gmra.mrb[12].mxu1 %vm739_vm2, %v1052_v28 }
 0x5ae   : > { %2964 = vmatprep.mubr.msk.bf16.mxu1 %vm3335_vm1, %v3334_v8  ;;  %2963 = vmatpush3.bf16.msra.mxu1 %v1166_v60  ;;  %v3177_v60 = vld [vmem:[%s3995_s12 + $0x8] sm:$0xff]  }
 0x5af   : > { %2974 = vmatprep.subr.bf16.mxu1 %v3334_v8 }
 0x670   : > { %v1045_v29 = vpop.f32.mrb[12].mxu0 }
 0x671   : > { %v2948_v30 = vpop.f32.mrb[13].mxu0 }
 0x672   : > { %v1048_v31 = vpop.f32.mrb[14].mxu0 }
 0x673   : > { %v2949_v32 = vpop.f32.mrb[15].mxu0 }
 0x678   : > { %v999_v33 = vpop.f32.mrb[8].mxu1 }
 0x679   : > { %v3608_v34 = vadd.f32 %v1045_v29, %v999_v33  ;;  %v2942_v35 = vpop.f32.mrb[9].mxu1 }
 0x67a   : > { %v1002_v36 = vpop.f32.mrb[10].mxu1 }
 0x67b   : > { %v2943_v37 = vpop.f32.mrb[11].mxu1 }
 0x680   : > { %v1095_v39 = vpop.f32.mrb[12].mxu1 }
 0x681   : > { %v1096_v40 = vadd.f32 %v1095_v39, %v3561_v38  ;;  %v2954_v41 = vpop.f32.mrb[13].mxu1 }
 0x682   : > { %v1098_v42 = vpop.f32.mrb[14].mxu1 }
 0x683   : > { %v2955_v43 = vpop.f32.mrb[15].mxu1  ;;  %v1101_v44 = vsel %vm739_vm2, %v1096_v40, -inf }
 0x684   : > { %1102 = vmax.xlane.f32.xlu1 %v1101_v44 }
 0x695   : > { %1113 = vrot.lane.b32.xlu1 %v3538_v25, %s4008_s29  ;;  %s4009_s29 = smov 40  }
 0x699   : > { %1209 = vrot.lane.b32.xlu1 %v3538_v25, %s4010_s23  ;;  %s3897_s23 = sand.u32 1, %s3324_s30  }
 0x711   : > { %v1103_v45 = vpop.xlane.xlu1 %1102 }
 0x712   : > { %v1104_v46 = vsub.f32 %v1096_v40, %v1103_v45 }
 0x714   : > { %v1105_v47 = vmul.f32 1.442695, %v1104_v46 }
 0x715   : > { %v1114_v48 = vpop.permute.xlu1 %1113 }
 0x716   : > { %3200 = vpow2.f32 %v1105_v47  ;;  %v1119_v49 = vsel %vm803_vm4, %v1114_v48, 0  ;;  %v3174_v48 = vld [vmem:[%s3993_s10] sm:$0xff]  }
 0x717   : > { %2957 = vmatpush3.bf16.msra.mxu0 %v1119_v49  ;;  %v3175_v49 = vld [vmem:[%s3993_s10 + $0x8] sm:$0xff]  }
 0x718   : > { %2968 = vmatprep.subr.bf16.mxu0 %v3334_v8 }
 0x719   : > { %v1210_v58 = vpop.permute.xlu1 %1209 }
 0x720   : > { %v3201_v50 = vpop.eup %3200 }
 0x721   : > { %v1107_v51 = vsel %vm739_vm2, %v3201_v50, 0.0 }
 0x722   : > { %1108 = vadd.xlane.f32.xlu0 %v1107_v51 }
 0x738   : > { %1211 = vrot.lane.b32.xlu0 %v3538_v25, %s4011_s24 }
 0x7af   : > { %v1109_v52 = vpop.xlane.xlu0 %1108 }
 0x7b0   : > { %3202 = vrcp.f32 %v1109_v52 }
 0x7b3   : > { %v1212_v55 = vpop.permute.xlu0 %1211 }
 0x7b4   : > { %v1217_v57 = vsel %vm739_vm2, %v1212_v55, 0  ;;  %v2753_v55 = vld [vmem:[%s3992_s9] ss:$0 sm:$0xff] }
 0x7ba   : > { %v3203_v53 = vpop.eup %3202 }
 0x7bb   : > { %v1111_v54 = vmul.f32 %v3203_v53, %v3201_v50  ;;  %v2752_v53 = vld [vmem:[%s3991_s8] ss:$0 sm:$0xff] }
 0x7bd   : > { %v1112_v56 = vpack.c.bf16 %v1111_v54, %v1111_v54 }
 0x7bf   : > { %2959 = vmatmul.mubr.msk.bf16.vlgmr.msra.gmra.mrb[16].mxu0 %vm739_vm2, %v1112_v56 }
 0x7c0   : > { %2969 = vmatpush3.bf16.xpose.msra.mxu0 %v1217_v57  ;;  %2970 = vmatprep.mubr.msk.bf16.mxu0 %vm3335_vm1, %v3334_v8 }
 0x7c1   : > { %2980 = vmatprep.subr.bf16.mxu0 %v3334_v8 }
 0x7c7   : > { %2971 = vmatmul.mubr.msk.bf16.vlgmr.msra.gmra.mrb[20].mxu0 %vm739_vm2, %v1210_v58 }
 0x7c8   : > { %2982 = vmatprep.mubr.msk.bf16.mxu0 %vm3335_vm1, %v3334_v8 }
 0x892   : > { %v1155_v61 = vpop.f32.mrb[16].mxu0 }
 0x893   : > { %v1161_v62 = vpack.c.bf16 %v1155_v61, %v1155_v61  ;;  %v2960_v63 = vpop.f32.mrb[17].mxu0  ;;  %v3178_v61 = vld [vmem:[%s3995_s12 + $0x10] sm:$0xff]  }
 0x894   : > { %v1158_v0 = vpop.f32.mrb[18].mxu0  ;;  %v2754_v63 = vld [vmem:[%s3994_s11] ss:$0 sm:$0xff] }
 0x895   : > { %v2961_v1 = vpop.f32.mrb[19].mxu0  ;;  %2965 = vmatmul.mubr.msk.bf16.vlgmr.msra.gmra.mrb[16].mxu1 %vm739_vm2, %v1161_v62  ;;  %v3179_v62 = vld [vmem:[%s3995_s12 + $0x18] sm:$0xff]  }
 0x896   : > { %2976 = vmatprep.mubr.msk.bf16.mxu1 %vm3335_vm1, %v3334_v8 }
 0x89a   : > { %v1253_v2 = vpop.f32.mrb[20].mxu0 }
 0x89b   : > { %v1254_v3 = vadd.f32 %v1253_v2, %v3561_v38  ;;  %v2972_v4 = vpop.f32.mrb[21].mxu0 }
 0x89c   : > { %v1256_v5 = vpop.f32.mrb[22].mxu0 }
 0x89d   : > { %v2973_v6 = vpop.f32.mrb[23].mxu0  ;;  %v1259_v7 = vsel %vm739_vm2, %v1254_v3, -inf }
 0x89e   : > { %1260 = vmax.xlane.f32.xlu1 %v1259_v7 }
 0x92b   : > { %v1261_v9 = vpop.xlane.xlu1 %1260 }
 0x92c   : > { %v1262_v10 = vsub.f32 %v1254_v3, %v1261_v9 }
 0x92e   : > { %v1263_v11 = vmul.f32 1.442695, %v1262_v10 }
 0x930   : > { %3204 = vpow2.f32 %v1263_v11 }
 0x93a   : > { %v3205_v12 = vpop.eup %3204 }
 0x93b   : > { %v1265_v13 = vsel %vm739_vm2, %v3205_v12, 0.0 }
 0x93c   : > { %1266 = vadd.xlane.f32.xlu0 %v1265_v13 }
 0x952   : > { %1271 = vrot.lane.b32.xlu0 %v3538_v25, %s4009_s29  ;;  %v728_v25 = vld [vmem:[%s4033_s6 + $0xc] sm:$0xf] }
 0x953   : > { %v1324_v27 = vsel %vm803_vm4, %v728_v25, 0 }
 0x954   : > { %2981 = vmatpush3.bf16.msra.mxu0 %v1324_v27 }
 0x955   : > { %2994 = vmatprep.subr.bf16.mxu0 %v3334_v8 }
 0x968   : > { %v1202_v14 = vpop.f32.mrb[16].mxu1 }
 0x969   : > { %v1208_v15 = vadd.f32 %v1202_v14, %v3608_v34  ;;  %v2966_v16 = vpop.f32.mrb[17].mxu1  ;;  %v2751_v34 = vld [vmem:[%s3990_s7] ss:$0 sm:$0xff] }
 0x96a   : > { %v1205_v17 = vpop.f32.mrb[18].mxu1  ;;  %v2758_v16 = vld [vmem:[%s3996_s13] ss:$0 sm:$0xff] }
 0x96b   : > { %v2967_v19 = vpop.f32.mrb[19].mxu1 }
 0x9c9   : > { %v1267_v20 = vpop.xlane.xlu0 %1266 }
 0x9ca   : > { %3206 = vrcp.f32 %v1267_v20 }
 0x9cd   : > { %v1272_v21 = vpop.permute.xlu0 %1271 }
 0x9ce   : > { %v1277_v22 = vsel %vm803_vm4, %v1272_v21, 0 }
 0x9cf   : > { %2975 = vmatpush3.bf16.msra.mxu1 %v1277_v22 }
 0x9d0   : > { %2986 = vmatprep.subr.bf16.mxu1 %v3334_v8 }
 0x9d4   : > { %v3207_v23 = vpop.eup %3206 }
 0x9d5   : > { %v1269_v24 = vmul.f32 %v3207_v23, %v3205_v12 }
 0x9d7   : > { %v1270_v26 = vpack.c.bf16 %v1269_v24, %v1269_v24 }
 0x9d9   : > { %2977 = vmatmul.mubr.msk.bf16.vlgmr.msra.gmra.mrb[20].mxu1 %vm739_vm2, %v1270_v26 }
 0x9da   : > { %2990 = vmatprep.mubr.msk.bf16.mxu1 %vm3335_vm1, %v3334_v8  ;;  %2987 = vmatpush3.bf16.msra.mxu1 %v3174_v48 }
 0x9db   : > { %2988 = vmatprep.subr.bf16.mxu1 %v3334_v8 }
 0x9de   : > { %2989 = vmatpush3.bf16.msra.mxu1 %v3175_v49 }
 0x9df   : > { %3006 = vmatprep.subr.bf16.mxu1 %v3334_v8 }
 0xaac   : > { %v1313_v28 = vpop.f32.mrb[20].mxu1 }
 0xaad   : > { %v1319_v29 = vpack.c.bf16 %v1313_v28, %v1313_v28  ;;  %v2978_v30 = vpop.f32.mrb[21].mxu1 }
 0xaae   : > { %v1316_v31 = vpop.f32.mrb[22].mxu1  ;;  %v3180_v30 = vld [vmem:[%s4028_s4 + $0x10] sm:$0xff]  }
 0xaaf   : > { %v2979_v32 = vpop.f32.mrb[23].mxu1  ;;  %2983 = vmatmul.mubr.msk.bf16.vlgmr.msra.gmra.mrb[24].mxu0 %vm739_vm2, %v1319_v29  ;;  %v3181_v31 = vld [vmem:[%s4028_s4 + $0x18] sm:$0xff]  }
 0xab0   : > { %3002 = vmatprep.mubr.msk.bf16.mxu0 %vm3335_vm1, %v3334_v8  ;;  %2995 = vmatpush3.bf16.msra.mxu0 %v3176_v59 }
 0xab1   : > { %2996 = vmatprep.subr.bf16.mxu0 %v3334_v8 }
 0xab4   : > { %2997 = vmatpush3.bf16.msra.mxu0 %v3177_v60 }
 0xab5   : > { %2998 = vmatprep.subr.bf16.mxu0 %v3334_v8 }
 0xab8   : > { %2999 = vmatpush3.bf16.msra.mxu0 %v3178_v61 }
 0xab9   : > { %3000 = vmatprep.subr.bf16.mxu0 %v3334_v8 }
 0xabc   : > { %3001 = vmatpush3.bf16.msra.mxu0 %v3179_v62 }
 0xabd   : > { %3020 = vmatprep.subr.bf16.mxu0 %v3334_v8 }
 0xb82   : > { %v1360_v33 = vpop.f32.mrb[24].mxu0 }
 0xb83   : > { %v1366_v35 = vadd.f32 %v1360_v33, %v1208_v15  ;;  %v2984_v36 = vpop.f32.mrb[25].mxu0 }
 0xb84   : > { %v1363_v37 = vpop.f32.mrb[26].mxu0  ;;  %v2764_v36 = vld [vmem:[%s3997_s14] ss:$0 sm:$0xff] }
 0xb85   : > { %v1374_v39 = vadd.f32 %v2751_v34, %v1366_v35  ;;  %v2985_v40 = vpop.f32.mrb[27].mxu0 }
 0xb87   : > { %v1375_v41 = vadd.f32 %v1374_v39, %v3528_v18  ;;  %v2765_v39 = vld [vmem:[%s3998_s15] ss:$0 sm:$0xff] }
 0xb89   : > { %v1378_v42 = vsel %vm629_vm0, %v1375_v41, 0.0 }
 0xb8a   : > { %1379 = vadd.xlane.f32.xlu1 %v1378_v42 }
 0xc17   : > { %v1380_v43 = vpop.xlane.xlu1 %1379 }
 0xc18   : > { %v1381_v44 = vmul.f32 0.03125, %v1380_v43  ;;  %v2771_v43 = vld [vmem:[%s4031_s5 + $0x1] ss:$0 sm:$0xff]  ;;  %s2601_s5 = scalar_lea.sflag [#allocation3], %s3897_s23 }
 0xc1a   : > { %v1382_v45 = vsub.f32 %v1375_v41, %v1381_v44 }
 0xc1c   : > { %v1383_v46 = vmul.f32 %v1382_v45, %v1382_v45 }
 0xc1e   : > { %v1384_v47 = vsel %vm629_vm0, %v1383_v46, 0.0 }
 0xc1f   : > { %1385 = vadd.xlane.f32.xlu1 %v1384_v47 }
 0xcac   : > { %v1386_v18 = vpop.xlane.xlu1 %1385 }
 0xcad   : > { %v1387_v50 = vmul.f32 0.03125, %v1386_v18 }
 0xcaf   : > { %v1388_v51 = vadd.f32 1e-12, %v1387_v50 }
 0xcb1   : > { %3208 = vrsqrt.f32 %v1388_v51 }
 0xcbb   : > { %v3209_v52 = vpop.eup %3208 }
 0xcbc   : > { %v1390_v54 = vmul.f32 %v3209_v52, %v1382_v45 }
 0xcbe   : > { %v1397_v56 = vmul.f32 %v2752_v53, %v1390_v54 }
 0xcc0   : > { %v1404_v57 = vadd.f32 %v2753_v55, %v1397_v56 }
 0xcc2   : > { %v1405_v58 = vpack.c.bf16 %v1404_v57, %v1404_v57 }
 0xcc4   : > { %2991 = vmatmul.mubr.msk.bf16.vlgmr.msra.gmra.mrb[24].mxu1 %vm629_vm0, %v1405_v58 }
 0xcc5   : > { %3010 = vmatprep.mubr.msk.bf16.mxu1 %vm3335_vm1, %v3334_v8  ;;  %3007 = vmatpush3.bf16.msra.mxu1 %v3180_v30 }
 0xcc6   : > { %3008 = vmatprep.subr.bf16.mxu1 %v3334_v8 }
 0xcc9   : > { %3009 = vmatpush3.bf16.msra.mxu1 %v3181_v31 }
 0xcca   : > { %3014 = vmatprep.subr.bf16.mxu1 %v3334_v8 }
 0xd97   : > { %v1466_v0 = vpop.f32.mrb[24].mxu1 }
 0xd98   : > { %v1467_v1 = vadd.f32 %v2754_v63, %v1466_v0  ;;  %v2992_v2 = vpop.f32.mrb[25].mxu1 }
 0xd99   : > { %v1469_v3 = vpop.f32.mrb[26].mxu1 }
 0xd9a   : > { %v1472_v4 = vmul.f32 %v1467_v1, %v1467_v1  ;;  %v2993_v5 = vpop.f32.mrb[27].mxu1 }
 0xd9c   : > { %v1473_v6 = vmul.f32 %v1472_v4, %v1467_v1 }
 0xd9e   : > { %v1474_v7 = vmul.f32 0.044715, %v1473_v6 }
 0xda0   : > { %v1475_v9 = vadd.f32 %v1474_v7, %v1467_v1 }
 0xda2   : > { %v1476_v10 = vmul.f32 0.7978846, %v1475_v9 }
 0xda4   : > { %3210 = vtanh.f32 %v1476_v10 }
 0xdae   : > { %v3211_v11 = vpop.eup %3210 }
 0xdaf   : > { %v1478_v12 = vadd.f32 1.0, %v3211_v11 }
 0xdb1   : > { %v1479_v13 = vmul.f32 0.5, %v1478_v12 }
 0xdb3   : > { %v1480_v14 = vmul.f32 %v1479_v13, %v1467_v1 }
 0xdb5   : > { %v1481_v15 = vpack.c.bf16 %v1480_v14, %v1480_v14 }
 0xdb7   : > { %3003 = vmatmul.mubr.msk.bf16.vlgmr.msra.gmra.mrb[28].mxu0 %vm1521_vm5, %v1481_v15 }
 0xdb8   : > { %3022 = vmatprep.mubr.msk.bf16.mxu0 %vm3335_vm1, %v3334_v8 }
 0xe8a   : > { %v1559_v17 = vpop.f32.mrb[28].mxu0 }
 0xe8b   : > { %v1560_v19 = vadd.f32 %v2758_v16, %v1559_v17  ;;  %v3004_v20 = vpop.f32.mrb[29].mxu0 }
 0xe8c   : > { %v1562_v21 = vpop.f32.mrb[30].mxu0 }
 0xe8d   : > { %v3005_v22 = vpop.f32.mrb[31].mxu0  ;;  %v1565_v23 = vadd.f32 %v1560_v19, %v1404_v57 }
 0xe8f   : > { %v1568_v24 = vsel %vm629_vm0, %v1565_v23, 0.0 }
 0xe90   : > { %1569 = vadd.xlane.f32.xlu1 %v1568_v24 }
 0xf1d   : > { %v1570_v26 = vpop.xlane.xlu1 %1569 }
 0xf1e   : > { %v1571_v25 = vmul.f32 0.03125, %v1570_v26 }
 0xf20   : > { %v1572_v27 = vsub.f32 %v1565_v23, %v1571_v25  ;;  %v2775_v25 = vld [vmem:[%s4033_s6 + $0x10] sm:$0xf] }
 0xf22   : > { %v1573_v28 = vmul.f32 %v1572_v27, %v1572_v27 }
 0xf24   : > { %v1574_v29 = vsel %vm629_vm0, %v1573_v28, 0.0  ;;  %v2776_v28 = vld [vmem:[%s4033_s6 + $0x14] sm:$0xf] }
 0xf25   : > { %1575 = vadd.xlane.f32.xlu1 %v1574_v29  ;;  %v1895_v29 = vsel %vm803_vm4, %v2776_v28, 0 }
 0xfb2   : > { %v1576_v32 = vpop.xlane.xlu1 %1575 }
 0xfb3   : > { %v1577_v33 = vmul.f32 0.03125, %v1576_v32 }
 0xfb5   : > { %v1578_v34 = vadd.f32 1e-12, %v1577_v33 }
 0xfb7   : > { %3212 = vrsqrt.f32 %v1578_v34 }
 0xfc1   : > { %v3213_v35 = vpop.eup %3212 }
 0xfc2   : > { %v1580_v37 = vmul.f32 %v3213_v35, %v1572_v27  ;;  %v1941_v27 = vsel %vm803_vm4, %v2775_v25, 0 }
 0xfc4   : > { %v1587_v40 = vmul.f32 %v2764_v36, %v1580_v37 }
 0xfc6   : > { %v3720_v41 = vadd.f32 %v2765_v39, %v1587_v40 }
 0xfc8   : > { %v1595_v42 = vpack.c.bf16 %v3720_v41, %v3720_v41 }
 0xfca   : > { %3011 = vmatmul.mubr.msk.bf16.vlgmr.msra.gmra.mrb[28].mxu1 %vm629_vm0, %v1595_v42 }
 0xfcb   : > { %3016 = vmatprep.mubr.msk.bf16.mxu1 %vm3335_vm1, %v3334_v8 }
0x109d   : > { %v1658_v44 = vpop.f32.mrb[28].mxu1 }
0x109e   : > { %v1659_v45 = vadd.f32 %v2771_v43, %v1658_v44  ;;  %v3012_v46 = vpop.f32.mrb[29].mxu1 }
0x109f   : > { %v1661_v47 = vpop.f32.mrb[30].mxu1 }
0x10a0   : > { %v3730_v48 = vpack.c.bf16 %v1659_v45, %v1659_v45  ;;  %v3013_v49 = vpop.f32.mrb[31].mxu1 }
0x10a2   : > { %1782 = vrot.lane.b32.xlu0 %v3730_v48, %s3338_s22  ;;  %1671 = vrot.lane.b32.xlu1 %v3730_v48, %s3337_s25  ;;  %s4035_s25 = smov 56   ;;  %s4036_s22 = smov 80  }
0x10a6   : > { %1780 = vrot.lane.b32.xlu0 %v3730_v48, %s4034_s28  ;;  %s4039_s28 = smov 72  }
0x1114   : > { %v1672_v18 = vpop.permute.xlu1 %1671  ;;  %v1783_v51 = vpop.permute.xlu0 %1782 }
0x1115   : > { %v1677_v50 = vsel %vm739_vm2, %v1672_v18, 0  ;;  %v1788_v52 = vsel %vm739_vm2, %v1783_v51, 0 }
0x1116   : > { %3015 = vmatpush3.bf16.xpose.msra.mxu1 %v1677_v50 }
0x1117   : > { %3026 = vmatprep.subr.bf16.mxu1 %v3334_v8 }
0x1118   : > { %v1781_v53 = vpop.permute.xlu0 %1780 }
0x111d   : > { %3017 = vmatmul.mubr.msk.bf16.vlgmr.msra.gmra.mrb[32].mxu1 %vm739_vm2, %v3730_v48 }
0x111e   : > { %3027 = vmatpush3.bf16.xpose.msra.mxu1 %v1788_v52  ;;  %3028 = vmatprep.mubr.msk.bf16.mxu1 %vm3335_vm1, %v3334_v8 }
0x111f   : > { %3038 = vmatprep.subr.bf16.mxu1 %v3334_v8 }
0x1125   : > { %3029 = vmatmul.mubr.msk.bf16.vlgmr.msra.gmra.mrb[36].mxu1 %vm739_vm2, %v1781_v53 }
0x1126   : > { %3040 = vmatprep.mubr.msk.bf16.mxu1 %vm3335_vm1, %v3334_v8  ;;  %3039 = vmatpush3.bf16.msra.mxu1 %v1895_v29 }
0x1127   : > { %3050 = vmatprep.subr.bf16.mxu1 %v3334_v8 }
0x11f0   : > { %v1713_v54 = vpop.f32.mrb[32].mxu1 }
0x11f1   : > { %v1714_v55 = vadd.f32 %v1713_v54, %v3561_v38  ;;  %v3018_v56 = vpop.f32.mrb[33].mxu1 }
0x11f2   : > { %v1716_v57 = vpop.f32.mrb[34].mxu1 }
0x11f3   : > { %v3019_v58 = vpop.f32.mrb[35].mxu1  ;;  %v1719_v59 = vsel %vm739_vm2, %v1714_v55, -inf }
0x11f4   : > { %1720 = vmax.xlane.f32.xlu0 %v1719_v59 }
0x11f8   : > { %v1824_v60 = vpop.f32.mrb[36].mxu1 }
0x11f9   : > { %v1825_v61 = vadd.f32 %v1824_v60, %v3561_v38  ;;  %v3030_v62 = vpop.f32.mrb[37].mxu1 }
0x11fa   : > { %v1827_v63 = vpop.f32.mrb[38].mxu1 }
0x11fb   : > { %v3031_v0 = vpop.f32.mrb[39].mxu1  ;;  %v1830_v1 = vsel %vm739_vm2, %v1825_v61, -inf }
0x11fc   : > { %1831 = vmax.xlane.f32.xlu1 %v1830_v1 }
0x120d   : > { %1842 = vrot.lane.b32.xlu1 %v3730_v48, %s4035_s25  ;;  %s4040_s25 = smov 104  }
0x1211   : > { %1985 = vrot.lane.b32.xlu1 %v3730_v48, %s4036_s22  ;;  %s4041_s22 = smov 48  }
0x1281   : > { %v1721_v2 = vpop.xlane.xlu0 %1720 }
0x1282   : > { %v1722_v3 = vsub.f32 %v1714_v55, %v1721_v2 }
0x1284   : > { %v1723_v4 = vmul.f32 1.442695, %v1722_v3 }
0x1286   : > { %3214 = vpow2.f32 %v1723_v4 }
0x1289   : > { %v1832_v5 = vpop.xlane.xlu1 %1831 }
0x128a   : > { %v1833_v6 = vsub.f32 %v1825_v61, %v1832_v5 }
0x128c   : > { %v1834_v7 = vmul.f32 1.442695, %v1833_v6 }
0x128d   : > { %v1843_v20 = vpop.permute.xlu1 %1842 }
0x128e   : > { %3216 = vpow2.f32 %v1834_v7  ;;  %v1848_v22 = vsel %vm803_vm4, %v1843_v20, 0 }
0x1290   : > { %v3215_v9 = vpop.eup %3214 }
0x1291   : > { %v1725_v10 = vsel %vm739_vm2, %v3215_v9, 0.0  ;;  %v1986_v35 = vpop.permute.xlu1 %1985 }
0x1292   : > { %1726 = vadd.xlane.f32.xlu0 %v1725_v10  ;;  %v1991_v42 = vsel %vm739_vm2, %v1986_v35, 0 }
0x1298   : > { %v3217_v11 = vpop.eup %3216 }
0x1299   : > { %v1836_v12 = vsel %vm739_vm2, %v3217_v11, 0.0 }
0x129a   : > { %1837 = vadd.xlane.f32.xlu0 %v1836_v12 }
0x12b0   : > { %1731 = vrot.lane.b32.xlu0 %v3730_v48, %s4037_s27 }
0x12b4   : > { %1983 = vrot.lane.b32.xlu0 %v3730_v48, %s4038_s20 }
0x131f   : > { %v1727_v13 = vpop.xlane.xlu0 %1726 }
0x1320   : > { %3218 = vrcp.f32 %v1727_v13 }
0x1327   : > { %v1838_v14 = vpop.xlane.xlu0 %1837 }
0x1328   : > { %3220 = vrcp.f32 %v1838_v14 }
0x132a   : > { %v3219_v15 = vpop.eup %3218 }
0x132b   : > { %v1729_v16 = vmul.f32 %v3219_v15, %v3215_v9  ;;  %v1732_v17 = vpop.permute.xlu0 %1731 }
0x132c   : > { %v1737_v19 = vsel %vm803_vm4, %v1732_v17, 0 }
0x132d   : > { %3021 = vmatpush3.bf16.msra.mxu0 %v1737_v19  ;;  %v1730_v21 = vpack.c.bf16 %v1729_v16, %v1729_v16 }
0x132e   : > { %3032 = vmatprep.subr.bf16.mxu0 %v3334_v8 }
0x132f   : > { %v1984_v44 = vpop.permute.xlu0 %1983 }
0x1330   : > { %3023 = vmatmul.mubr.msk.bf16.vlgmr.msra.gmra.mrb[32].mxu0 %vm739_vm2, %v1730_v21 }
0x1331   : > { %3033 = vmatpush3.bf16.msra.mxu0 %v1848_v22  ;;  %3034 = vmatprep.mubr.msk.bf16.mxu0 %vm3335_vm1, %v3334_v8 }
0x1332   : > { %v3221_v23 = vpop.eup %3220  ;;  %3044 = vmatprep.subr.bf16.mxu0 %v3334_v8 }
0x1333   : > { %v1840_v24 = vmul.f32 %v3221_v23, %v3217_v11  ;;  %v2777_v11 = vld [vmem:[%s4033_s6 + $0x18] sm:$0xf] }
0x1334   : > { %v2098_v12 = vsel %vm803_vm4, %v2777_v11, 0  ;;  %v3185_v11 = vld [vmem:[%s3995_s12 + $0x28] sm:$0xff]  }
0x1335   : > { %v1841_v26 = vpack.c.bf16 %v1840_v24, %v1840_v24 }
0x1338   : > { %3035 = vmatmul.mubr.msk.bf16.vlgmr.msra.gmra.mrb[36].mxu0 %vm739_vm2, %v1841_v26 }
0x1339   : > { %3046 = vmatprep.mubr.msk.bf16.mxu0 %vm3335_vm1, %v3334_v8  ;;  %3045 = vmatpush3.bf16.msra.mxu0 %v1941_v27 }
0x133a   : > { %3056 = vmatprep.subr.bf16.mxu0 %v3334_v8 }
0x1403   : > { %v1773_v30 = vpop.f32.mrb[32].mxu0 }
0x1404   : > { %v1779_v31 = vpack.c.bf16 %v1773_v30, %v1773_v30  ;;  %v3024_v32 = vpop.f32.mrb[33].mxu0 }
0x1405   : > { %v1776_v33 = vpop.f32.mrb[34].mxu0 }
0x1406   : > { %v3025_v34 = vpop.f32.mrb[35].mxu0  ;;  %3047 = vmatmul.mubr.msk.bf16.vlgmr.msra.gmra.mrb[40].mxu0 %vm739_vm2, %v1779_v31 }
0x1407   : > { %3058 = vmatprep.mubr.msk.bf16.mxu0 %vm3335_vm1, %v3334_v8 }
0x140b   : > { %v1884_v36 = vpop.f32.mrb[36].mxu0 }
0x140c   : > { %v1890_v37 = vpack.c.bf16 %v1884_v36, %v1884_v36  ;;  %v3036_v39 = vpop.f32.mrb[37].mxu0 }
0x140d   : > { %v1887_v40 = vpop.f32.mrb[38].mxu0 }
0x140e   : > { %v3037_v43 = vpop.f32.mrb[39].mxu0  ;;  %3041 = vmatmul.mubr.msk.bf16.vlgmr.msra.gmra.mrb[40].mxu1 %vm739_vm2, %v1890_v37  ;;  %v2778_v40 = vld [vmem:[%s4033_s6 + $0x1c] sm:$0xf] }
0x140f   : > { %3051 = vmatpush3.bf16.xpose.msra.mxu1 %v1991_v42  ;;  %3052 = vmatprep.mubr.msk.bf16.mxu1 %vm3335_vm1, %v3334_v8  ;;  %v2256_v42 = vsel %vm803_vm4, %v2778_v40, 0 }
0x1410   : > { %3062 = vmatprep.subr.bf16.mxu1 %v3334_v8 }
0x1416   : > { %3053 = vmatmul.mubr.msk.bf16.vlgmr.msra.gmra.mrb[44].mxu1 %vm739_vm2, %v1984_v44 }
0x1417   : > { %3064 = vmatprep.mubr.msk.bf16.mxu1 %vm3335_vm1, %v3334_v8  ;;  %3063 = vmatpush3.bf16.msra.mxu1 %v2098_v12  ;;  %v3186_v12 = vld [vmem:[%s3995_s12 + $0x30] sm:$0xff]  }
0x1418   : > { %3074 = vmatprep.subr.bf16.mxu1 %v3334_v8 }
0x14d9   : > { %v1977_v45 = vpop.f32.mrb[40].mxu0 }
0x14da   : > { %v3048_v46 = vpop.f32.mrb[41].mxu0 }
0x14db   : > { %v1980_v47 = vpop.f32.mrb[42].mxu0 }
0x14dc   : > { %v3049_v49 = vpop.f32.mrb[43].mxu0 }
0x14e1   : > { %v1931_v18 = vpop.f32.mrb[40].mxu1 }
0x14e2   : > { %v3794_v50 = vadd.f32 %v1977_v45, %v1931_v18  ;;  %v3042_v51 = vpop.f32.mrb[41].mxu1  ;;  %v2792_v18 = vld [vmem:[%s3990_s7 + $0x1] ss:$0 sm:$0xff] }
0x14e3   : > { %v1934_v52 = vpop.f32.mrb[42].mxu1 }
0x14e4   : > { %v3043_v53 = vpop.f32.mrb[43].mxu1 }
0x14e9   : > { %v2027_v54 = vpop.f32.mrb[44].mxu1 }
0x14ea   : > { %v2028_v55 = vadd.f32 %v2027_v54, %v3561_v38  ;;  %v3054_v56 = vpop.f32.mrb[45].mxu1 }
0x14eb   : > { %v2030_v57 = vpop.f32.mrb[46].mxu1 }
0x14ec   : > { %v3055_v58 = vpop.f32.mrb[47].mxu1  ;;  %v2033_v59 = vsel %vm739_vm2, %v2028_v55, -inf }
0x14ed   : > { %2034 = vmax.xlane.f32.xlu1 %v2033_v59 }
0x14fe   : > { %2143 = vrot.lane.b32.xlu1 %v3730_v48, %s4039_s28 }
0x1502   : > { %2141 = vrot.lane.b32.xlu1 %v3730_v48, %s4040_s25  ;;  %s2731_s25 = sshll.u32 %s3897_s23, 3 }
0x1503   : > { %s608_s20 = scalar_lea.vmem [#allocation2], %s2731_s25 }
0x1504   : > { %s2618_s28 = sshll.u32 %s608_s20, 4  ;;  %s2619_s28 = int_to_ptr.vmem [resolvable:$true] %s2618_s28 }
0x1505   : > { %s3238_s6 = scalar_lea.vmem %s2619_s28, 128 }
0x1506   : > { %p3239_p11 = scmp.ne.s32.totalorder %s2619_s28, %s3238_s6 }
0x1508   : > { %p3240_p12 = pnand %p3239_p11, %p3488_p5 }
0x150a   : > { %p3241_p13 = pneg %p3240_p12 }
0x157a   : > { %v2035_v60 = vpop.xlane.xlu1 %2034 }
0x157b   : > { %v2036_v61 = vsub.f32 %v2028_v55, %v2035_v60 }
0x157d   : > { %v2037_v62 = vmul.f32 1.442695, %v2036_v61 }
0x157e   : > { %v2144_v6 = vpop.permute.xlu1 %2143 }
0x157f   : > { %3222 = vpow2.f32 %v2037_v62  ;;  %v2149_v9 = vsel %vm739_vm2, %v2144_v6, 0  ;;  %v3182_v62 = vld [vmem:[%s3993_s10 + $0x10] sm:$0xff]  }
0x1582   : > { %v2142_v10 = vpop.permute.xlu1 %2141 }
0x1589   : > { %v3223_v63 = vpop.eup %3222 }
0x158a   : > { %v2039_v0 = vsel %vm739_vm2, %v3223_v63, 0.0 }
0x158b   : > { %2040 = vadd.xlane.f32.xlu0 %v2039_v0 }
0x15a1   : > { %2045 = vrot.lane.b32.xlu0 %v3730_v48, %s4041_s22  ;;  %s3348_s22 = smov [#allocation2]  }
0x15a2   : > { %s3242_s25 = sshll.u32 %s3348_s22, 4  ;;  %s3243_s25 = int_to_ptr.vmem [resolvable:$false] %s3242_s25 }
0x15a3   : > { %s3244_s27 = scalar_lea.vmem %s3243_s25, 256  ;;  %p3245_p0 = scmp.lt.s32.totalorder %s2619_s28, %s3243_s25 }
0x15a4   : > { %p3246_p1 = scmp.lt.s32.totalorder %s3244_s27, %s3238_s6 }
0x15a6   : > { %p3247_p2 = por %p3246_p1, %p3245_p0 }
0x15a8   : > { %p3248_p3 = pnand %p3247_p2, %p3241_p13 }
0x1618   : > { %v2041_v1 = vpop.xlane.xlu0 %2040 }
0x1619   : > { %3224 = vrcp.f32 %v2041_v1 }
0x161c   : > { %v2046_v2 = vpop.permute.xlu0 %2045 }
0x161d   : > { %v2051_v3 = vsel %vm803_vm4, %v2046_v2, 0 }
0x161e   : > { %3057 = vmatpush3.bf16.msra.mxu0 %v2051_v3  ;;  %v2795_v3 = vld [vmem:[%s3991_s8 + $0x1] ss:$0 sm:$0xff] }
0x161f   : > { %3068 = vmatprep.subr.bf16.mxu0 %v3334_v8 }
0x1623   : > { %v3225_v4 = vpop.eup %3224 }
0x1624   : > { %v2043_v5 = vmul.f32 %v3225_v4, %v3223_v63  ;;  %v3183_v63 = vld [vmem:[%s3993_s10 + $0x18] sm:$0xff]  }
0x1626   : > { %v2044_v7 = vpack.c.bf16 %v2043_v5, %v2043_v5  ;;  %v2796_v5 = vld [vmem:[%s3992_s9 + $0x1] ss:$0 sm:$0xff] }
0x1628   : > { %3059 = vmatmul.mubr.msk.bf16.vlgmr.msra.gmra.mrb[44].mxu0 %vm739_vm2, %v2044_v7 }
0x1629   : > { %3069 = vmatpush3.bf16.xpose.msra.mxu0 %v2149_v9  ;;  %3070 = vmatprep.mubr.msk.bf16.mxu0 %vm3335_vm1, %v3334_v8 }
0x162a   : > { %3080 = vmatprep.subr.bf16.mxu0 %v3334_v8 }
0x1630   : > { %3071 = vmatmul.mubr.msk.bf16.vlgmr.msra.gmra.mrb[48].mxu0 %vm739_vm2, %v2142_v10  ;;  %v3184_v10 = vld [vmem:[%s3995_s12 + $0x20] sm:$0xff]  }
0x1631   : > { %3082 = vmatprep.mubr.msk.bf16.mxu0 %vm3335_vm1, %v3334_v8  ;;  %3081 = vmatpush3.bf16.msra.mxu0 %v2256_v42 }
0x1632   : > { %3094 = vmatprep.subr.bf16.mxu0 %v3334_v8 }
0x16fb   : > { %v2087_v13 = vpop.f32.mrb[44].mxu0 }
0x16fc   : > { %v2093_v14 = vpack.c.bf16 %v2087_v13, %v2087_v13  ;;  %v3060_v15 = vpop.f32.mrb[45].mxu0  ;;  %v3187_v13 = vld [vmem:[%s3995_s12 + $0x38] sm:$0xff]  }
0x16fd   : > { %v2090_v16 = vpop.f32.mrb[46].mxu0 }
0x16fe   : > { %v3061_v17 = vpop.f32.mrb[47].mxu0  ;;  %3065 = vmatmul.mubr.msk.bf16.vlgmr.msra.gmra.mrb[48].mxu1 %vm739_vm2, %v2093_v14  ;;  %v2802_v14 = vld [vmem:[%s3994_s11 + $0x1] ss:$0 sm:$0xff] }
0x16ff   : > { %3076 = vmatprep.mubr.msk.bf16.mxu1 %vm3335_vm1, %v3334_v8 }
0x1703   : > { %v2185_v19 = vpop.f32.mrb[48].mxu0 }
0x1704   : > { %v2186_v20 = vadd.f32 %v2185_v19, %v3561_v38  ;;  %v3072_v21 = vpop.f32.mrb[49].mxu0 }
0x1705   : > { %v2188_v22 = vpop.f32.mrb[50].mxu0 }
0x1706   : > { %v3073_v23 = vpop.f32.mrb[51].mxu0  ;;  %v2191_v24 = vsel %vm739_vm2, %v2186_v20, -inf }
0x1707   : > { %2192 = vmax.xlane.f32.xlu0 %v2191_v24 }
0x171d   : > { %2203 = vrot.lane.b32.xlu0 %v3730_v48, %s4042_s2  ;;  %s2829_s2 = sshll.u32 %s3471_s1, 7 }
0x171e   : > { %s3912_s24 = scalar_lea.hbm %s4001_s18, %s2829_s2 }
0x1794   : > { %v2193_v26 = vpop.xlane.xlu0 %2192 }
0x1795   : > { %v2194_v25 = vsub.f32 %v2186_v20, %v2193_v26 }
0x1797   : > { %v2195_v27 = vmul.f32 1.442695, %v2194_v25 }
0x1798   : > { %v2204_v28 = vpop.permute.xlu0 %2203 }
0x1799   : > { %3226 = vpow2.f32 %v2195_v27  ;;  %v2209_v29 = vsel %vm803_vm4, %v2204_v28, 0 }
0x179a   : > { %3075 = vmatpush3.bf16.msra.mxu1 %v2209_v29 }
0x179b   : > { %3086 = vmatprep.subr.bf16.mxu1 %v3334_v8 }
0x17a3   : > { %v3227_v38 = vpop.eup %3226 }
0x17a4   : > { %v2197_v30 = vsel %vm739_vm2, %v3227_v38, 0.0 }
0x17a5   : > { %2198 = vadd.xlane.f32.xlu1 %v2197_v30  ;;  %v2815_v30 = vld [vmem:[%s3996_s13 + $0x1] ss:$0 sm:$0xff] }
0x17d1   : > { %v2134_v31 = vpop.f32.mrb[48].mxu1 }
0x17d2   : > { %v2140_v32 = vadd.f32 %v2134_v31, %v3794_v50  ;;  %v3066_v33 = vpop.f32.mrb[49].mxu1 }
0x17d3   : > { %v2137_v34 = vpop.f32.mrb[50].mxu1 }
0x17d4   : > { %v3067_v48 = vpop.f32.mrb[51].mxu1 }
0x1832   : > { %v2199_v35 = vpop.xlane.xlu1 %2198 }
0x1833   : > { %3228 = vrcp.f32 %v2199_v35 }
0x183d   : > { %v3229_v36 = vpop.eup %3228 }
0x183e   : > { %v2201_v37 = vmul.f32 %v3229_v36, %v3227_v38 }
0x1840   : > { %v2202_v39 = vpack.c.bf16 %v2201_v37, %v2201_v37 }
0x1842   : > { %3077 = vmatmul.mubr.msk.bf16.vlgmr.msra.gmra.mrb[52].mxu1 %vm739_vm2, %v2202_v39 }
0x1843   : > { %3090 = vmatprep.mubr.msk.bf16.mxu1 %vm3335_vm1, %v3334_v8  ;;  %3087 = vmatpush3.bf16.msra.mxu1 %v3182_v62 }
0x1844   : > { %3088 = vmatprep.subr.bf16.mxu1 %v3334_v8 }
0x1847   : > { %3089 = vmatpush3.bf16.msra.mxu1 %v3183_v63 }
0x1848   : > { %3106 = vmatprep.subr.bf16.mxu1 %v3334_v8 }
0x1915   : > { %v2245_v43 = vpop.f32.mrb[52].mxu1 }
0x1916   : > { %v2251_v44 = vpack.c.bf16 %v2245_v43, %v2245_v43  ;;  %v3078_v45 = vpop.f32.mrb[53].mxu1 }
0x1917   : > { %v2248_v46 = vpop.f32.mrb[54].mxu1  ;;  %v3189_v45 = vld [vmem:[%s3999_s16 + $0x8] sm:$0xff]  }
0x1918   : > { %v3079_v47 = vpop.f32.mrb[55].mxu1  ;;  %3083 = vmatmul.mubr.msk.bf16.vlgmr.msra.gmra.mrb[52].mxu0 %vm739_vm2, %v2251_v44  ;;  %v3188_v44 = vld [vmem:[%s3999_s16] sm:$0xff]  }
0x1919   : > { %3102 = vmatprep.mubr.msk.bf16.mxu0 %vm3335_vm1, %v3334_v8  ;;  %3095 = vmatpush3.bf16.msra.mxu0 %v3184_v10 }
0x191a   : > { %3096 = vmatprep.subr.bf16.mxu0 %v3334_v8 }
0x191d   : > { %3097 = vmatpush3.bf16.msra.mxu0 %v3185_v11 }
0x191e   : > { %3098 = vmatprep.subr.bf16.mxu0 %v3334_v8 }
0x1921   : > { %3099 = vmatpush3.bf16.msra.mxu0 %v3186_v12 }
0x1922   : > { %3100 = vmatprep.subr.bf16.mxu0 %v3334_v8 }
0x1925   : > { %3101 = vmatpush3.bf16.msra.mxu0 %v3187_v13 }
0x19eb   : > { %v2292_v49 = vpop.f32.mrb[52].mxu0 }
0x19ec   : > { %v2298_v50 = vadd.f32 %v2292_v49, %v2140_v32  ;;  %v3084_v51 = vpop.f32.mrb[53].mxu0 }
0x19ed   : > { %v2295_v52 = vpop.f32.mrb[54].mxu0 }
0x19ee   : > { %v2307_v53 = vadd.f32 %v2792_v18, %v2298_v50  ;;  %v3085_v54 = vpop.f32.mrb[55].mxu0  ;;  %v2823_v50 = vld [vmem:[%s3997_s14 + $0x1] ss:$0 sm:$0xff] }
0x19f0   : > { %v2308_v55 = vadd.f32 %v2307_v53, %v3720_v41 }
0x19f2   : > { %v2313_v56 = vsel %vm629_vm0, %v2308_v55, 0.0 }
0x19f3   : > { %2314 = vadd.xlane.f32.xlu1 %v2313_v56 }
0x1a80   : > { %v2315_v57 = vpop.xlane.xlu1 %2314 }
0x1a81   : > { %v2316_v58 = vmul.f32 0.03125, %v2315_v57 }
0x1a83   : > { %v2317_v59 = vsub.f32 %v2308_v55, %v2316_v58 }
0x1a85   : > { %v2318_v60 = vmul.f32 %v2317_v59, %v2317_v59 }
0x1a87   : > { %v2319_v61 = vsel %vm629_vm0, %v2318_v60, 0.0 }
0x1a88   : > { %2320 = vadd.xlane.f32.xlu1 %v2319_v61 }
0x1b15   : > { %v2321_v41 = vpop.xlane.xlu1 %2320 }
0x1b16   : > { %v2322_v0 = vmul.f32 0.03125, %v2321_v41 }
0x1b18   : > { %v2323_v1 = vadd.f32 1e-12, %v2322_v0 }
0x1b1a   : > { %3230 = vrsqrt.f32 %v2323_v1 }
0x1b24   : > { %v3231_v2 = vpop.eup %3230 }
0x1b25   : > { %v2325_v4 = vmul.f32 %v3231_v2, %v2317_v59 }
0x1b27   : > { %v2332_v6 = vmul.f32 %v2795_v3, %v2325_v4 }
0x1b29   : > { %v2339_v7 = vadd.f32 %v2796_v5, %v2332_v6 }
0x1b2b   : > { %v2340_v9 = vpack.c.bf16 %v2339_v7, %v2339_v7 }
0x1b2d   : > { %3091 = vmatmul.mubr.msk.bf16.vlgmr.msra.gmra.mrb[56].mxu1 %vm629_vm0, %v2340_v9 }
0x1b2e   : > { %3110 = vmatprep.mubr.msk.bf16.mxu1 %vm3335_vm1, %v3334_v8  ;;  %3107 = vmatpush3.bf16.msra.mxu1 %v3188_v44 }
0x1b2f   : > { %3108 = vmatprep.subr.bf16.mxu1 %v3334_v8  ;;  %v2824_v8 = vld [vmem:[%s3998_s15 + $0x1] ss:$0 sm:$0xff] }
0x1b32   : > { %3109 = vmatpush3.bf16.msra.mxu1 %v3189_v45 }
0x1c00   : > { %v2403_v15 = vpop.f32.mrb[56].mxu1 }
0x1c01   : > { %v2404_v16 = vadd.f32 %v2802_v14, %v2403_v15  ;;  %v3092_v17 = vpop.f32.mrb[57].mxu1 }
0x1c02   : > { %v2406_v19 = vpop.f32.mrb[58].mxu1 }
0x1c03   : > { %v2409_v20 = vmul.f32 %v2404_v16, %v2404_v16  ;;  %v3093_v21 = vpop.f32.mrb[59].mxu1 }
0x1c05   : > { %v2410_v22 = vmul.f32 %v2409_v20, %v2404_v16 }
0x1c07   : > { %v2411_v23 = vmul.f32 0.044715, %v2410_v22 }
0x1c09   : > { %v2412_v24 = vadd.f32 %v2411_v23, %v2404_v16 }
0x1c0b   : > { %v2413_v26 = vmul.f32 0.7978846, %v2412_v24 }
0x1c0d   : > { %3232 = vtanh.f32 %v2413_v26 }
0x1c17   : > { %v3233_v25 = vpop.eup %3232 }
0x1c18   : > { %v2415_v27 = vadd.f32 1.0, %v3233_v25 }
0x1c1a   : > { %v2416_v28 = vmul.f32 0.5, %v2415_v27 }
0x1c1c   : > { %v2417_v29 = vmul.f32 %v2416_v28, %v2404_v16 }
0x1c1e   : > { %v2418_v38 = vpack.c.bf16 %v2417_v29, %v2417_v29 }
0x1c20   : > { %3103 = vmatmul.mubr.msk.bf16.vlgmr.msra.gmra.mrb[56].mxu0 %vm1521_vm5, %v2418_v38 }
0x1cf3   : > { %v2497_v31 = vpop.f32.mrb[56].mxu0 }
0x1cf4   : > { %v2498_v32 = vadd.f32 %v2815_v30, %v2497_v31  ;;  %v3104_v33 = vpop.f32.mrb[57].mxu0 }
0x1cf5   : > { %v2500_v34 = vpop.f32.mrb[58].mxu0 }
0x1cf6   : > { %v3105_v48 = vpop.f32.mrb[59].mxu0  ;;  %v2503_v35 = vadd.f32 %v2498_v32, %v2339_v7 }
0x1cf8   : > { %v2508_v36 = vsel %vm629_vm0, %v2503_v35, 0.0 }
0x1cf9   : > { %2509 = vadd.xlane.f32.xlu1 %v2508_v36 }
0x1d86   : > { %v2510_v37 = vpop.xlane.xlu1 %2509 }
0x1d87   : > { %v2511_v39 = vmul.f32 0.03125, %v2510_v37 }
0x1d89   : > { %v2512_v40 = vsub.f32 %v2503_v35, %v2511_v39 }
0x1d8b   : > { %v2513_v42 = vmul.f32 %v2512_v40, %v2512_v40 }
0x1d8d   : > { %v2514_v43 = vsel %vm629_vm0, %v2513_v42, 0.0 }
0x1d8e   : > { %2515 = vadd.xlane.f32.xlu1 %v2514_v43 }
0x1e1b   : > { %v2516_v46 = vpop.xlane.xlu1 %2515 }
0x1e1c   : > { %v2517_v47 = vmul.f32 0.03125, %v2516_v46 }
0x1e1e   : > { %v2518_v49 = vadd.f32 1e-12, %v2517_v47 }
0x1e20   : > { %3234 = vrsqrt.f32 %v2518_v49 }
0x1e2a   : > { %v3235_v18 = vpop.eup %3234 }
0x1e2b   : > { %v2520_v51 = vmul.f32 %v3235_v18, %v2512_v40 }
0x1e2d   : > { %v2527_v52 = vmul.f32 %v2823_v50, %v2520_v51 }
0x1e2f   : > { %v2534_v53 = vadd.f32 %v2824_v8, %v2527_v52 }
0x1e31   : > { %v2536_v54 = vpack.c.bf16 %v2534_v53, %v2534_v53  ;;  %2535 = vst.msk [vmem:[%s608_s20] sm:$0xff] %vm629_vm0, %v2534_v53 }
0x1e33   : > { %3111 = vmatmul.mubr.msk.bf16.vlgmr.msra.gmra.mrb[60].mxu1 %vm629_vm0, %v2536_v54 }
0x1e34   : > { %3251 = shalt.err (!%p3248_p3)
}
0x1e35   : > { %s3252_s4 = scalar_lea.hbm %s3912_s24, 128  ;;  %s3256_s29 = scalar_lea.hbm %s4001_s18, 256 }
0x1e36   : > { %p3253_p4 = scmp.ne.s32.totalorder %s3912_s24, %s3252_s4  ;;  %p3257_p9 = scmp.lt.u32.totalorder %s3912_s24, %s4001_s18 }
0x1e37   : > { %p3258_p10 = scmp.lt.u32.totalorder %s3256_s29, %s3252_s4  ;;  %p3260_p12 = scmp.lt.u32.totalorder %s3252_s4, %s3912_s24 }
0x1e38   : > { %p3254_p7 = pnand %p3253_p4, %p3488_p5 }
0x1e39   : > { %p3259_p11 = por %p3258_p10, %p3257_p9 }
0x1e3a   : > { %p3255_p8 = pneg %p3254_p7 }
0x1e3b   : > { %p3261_p13 = por %p3260_p12, %p3259_p11 }
0x1e3d   : > { %p3262_p0 = pnand %p3261_p13, %p3255_p8 }
0x1e3f   : > { %3265 = shalt.err (!%p3262_p0)
}
0x1e40   : > { %3114 = dma.vmem_to_hbm [thread:$0]  (%p3488_p5), %s2619_s28, 128, %s3912_s24, %s2601_s5   ;;  %v2541_v55 = vld [vmem:[%s4000_s17] sm:$0x1]  ;;  %vm2598_vm6 = vcmask 253952  }
0x1e41   : > { %s2830_s4 = sshll.u32 %s3471_s1, 4  ;;  %s614_s20 = scalar_lea.vmem [#allocation4], %s3897_s23 }
0x1e42   : > { %s2631_s2 = sshll.u32 %s614_s20, 4  ;;  %s3940_s5 = scalar_lea.hbm %s4002_s19, %s2830_s4  ;;  %s3942_s2 = int_to_ptr.vmem [resolvable:$true] %s2631_s2 }
0x1e43   : > { %s2606_s24 = scalar_lea.sflag [#allocation5], %s3897_s23  ;;  %s3266_s28 = scalar_lea.vmem %s3942_s2, 16 }
0x1e44   : > { %p3267_p1 = scmp.ne.s32.totalorder %s3942_s2, %s3266_s28  ;;  %s3349_s1 = smov [#allocation4]  }
0x1e45   : > { %s3270_s25 = sshll.u32 %s3349_s1, 4  ;;  %s3271_s25 = int_to_ptr.vmem [resolvable:$false] %s3270_s25 }
0x1e46   : > { %p3268_p2 = pnand %p3267_p1, %p3488_p5  ;;  %s3272_s6 = scalar_lea.vmem %s3271_s25, 32 }
0x1e47   : > { %p3273_p4 = scmp.lt.s32.totalorder %s3942_s2, %s3271_s25  ;;  %p3274_p7 = scmp.lt.s32.totalorder %s3272_s6, %s3266_s28 }
0x1e48   : > { %p3269_p3 = pneg %p3268_p2 }
0x1e49   : > { %p3275_p8 = por %p3274_p7, %p3273_p4 }
0x1e4b   : > { %p3276_p9 = pnand %p3275_p8, %p3269_p3 }
0x1f06   : > { %v2591_v56 = vpop.f32.mrb[60].mxu1 }
0x1f07   : > { %v2592_v57 = vadd.f32 %v2591_v56, %v2541_v55  ;;  %v3112_v58 = vpop.f32.mrb[61].mxu1 }
0x1f08   : > { %v2594_v59 = vpop.f32.mrb[62].mxu1 }
0x1f09   : > { %3236 = vtanh.f32 %v2592_v57  ;;  %v3113_v60 = vpop.f32.mrb[63].mxu1 }
0x1f13   : > { %v3237_v61 = vpop.eup %3236 }
0x1f14   : > { %2599 = vst.msk [vmem:[%s614_s20] sm:$0x1] %vm2598_vm6, %v3237_v61 }
0x1f15   : > { %3279 = shalt.err (!%p3276_p9)
}
0x1f16   : > { %s3280_s23 = scalar_lea.hbm %s3940_s5, 16  ;;  %s3284_s20 = scalar_lea.hbm %s4002_s19, 32 }
0x1f17   : > { %p3281_p10 = scmp.ne.s32.totalorder %s3940_s5, %s3280_s23  ;;  %p3285_p13 = scmp.lt.u32.totalorder %s3940_s5, %s4002_s19 }
0x1f18   : > { %p3286_p0 = scmp.lt.u32.totalorder %s3284_s20, %s3280_s23  ;;  %p3288_p2 = scmp.lt.u32.totalorder %s3280_s23, %s3940_s5 }
0x1f19   : > { %p3282_p11 = pnand %p3281_p10, %p3488_p5 }
0x1f1a   : > { %p3287_p1 = por %p3286_p0, %p3285_p13 }
0x1f1b   : > { %p3283_p12 = pneg %p3282_p11 }
0x1f1c   : > { %p3289_p3 = por %p3288_p2, %p3287_p1 }
0x1f1e   : > { %p3290_p4 = pnand %p3289_p3, %p3283_p12 }
0x1f20   : > { %3293 = shalt.err (!%p3290_p4)
}
0x1f21   : > { %3115 = dma.vmem_to_hbm [thread:$0]  (%p3488_p5), %s3942_s2, 16, %s3940_s5, %s2606_s24  }
0x1f22 PF: > { %p3125_p7 = scmp.ge.s32.totalorder %s3332_s21, 2  ;;  %s2643_s28 = sand.u32 1, %s3320_s0  }
0x1f23   : > { %s2644_s1 = scalar_lea.sflag [#allocation3], %s2643_s28 }
0x1f24   : > { %p3119_p8 = pnand %p3125_p7, %p3492_p6 }
0x1f26   : > { %3311 = dma.done.wait (!%p3119_p8), %s2644_s1, 128  }
0x1f27   : > { %3313 = vsyncadd (!%p3119_p8), %s2644_s1, 4294967168  ;;  %s2653_s25 = scalar_lea.sflag [#allocation5], %s2643_s28 }
0x1f28   : > { %3315 = dma.done.wait (!%p3119_p8), %s2653_s25, 16  }
0x1f29   : > { %3317 = vsyncadd (!%p3119_p8), %s2653_s25, 4294967280  ;;  %s4043_s21 = sld [smem:[#allocation9_spill]]  ;;  %s4044_s3 = sld [smem:[#allocation8_spill]] }
0x1f2a   : > { %s4045_s20 = sld [smem:[#allocation10_spill]]  ;;  %s4046_s0 = smov %s3324_s30 }
0x1f2f   : > { %p33_p5 = scmp.ge.s32.totalorder %s4043_s21, 4   ;;  %s4047_s30 = smov %s4044_s3 }
0x1f31   :  { %35 = sbr.rel (!%p33_p5) target bundleno = 13 (0xd), region = 159 }
0x1f38   :  { %2657 = vsyncpa [#allocation3], 1 }
0x1f39   :  { %2659 = vsyncpa [#allocation3 + $0x1], 1 }
0x1f3a   :  { %2660 = vsyncpa [#allocation5], 1 }
0x1f3b   :  { %2662 = vsyncpa [#allocation5 + $0x1], 1 }

</bundles_post_ra>
